<compile_context>
chip_gen: v6e
topology: v6e:2x2x1
jax: 0.10.0
libtpu: 0.0.40
codegen_flags: <defaults>
</compile_context>

<pallas_src>
from functools import partial

import jax
import jax.numpy as jnp
from jax.experimental import pallas as pl
from jax.experimental.pallas import tpu as pltpu

_LANE = 128
_TCHUNK = 8  # timesteps processed per grid step


def _round_up(x, m):
    return (x + m - 1) // m * m


# ----------------------------------------------------------------------------
# Kernel: one chunk of 8 timesteps per grid step
# ----------------------------------------------------------------------------
def decoder_kernel(x_ref, h0_ref,                     # inputs
                   wih_ref, whh_ref, bgi_ref, bhn_ref,
                   wout_ref, bout_ref,
                   logp_ref, hfin_ref,                # outputs
                   hcarry, hseq,                      # VMEM scratch
                   *, seq_len):
    t = pl.program_id(0)
    Hp = whh_ref.shape[0]
    C = x_ref.shape[0]

    # Initialize the hidden carry from the caller's hidden on the first chunk.
    @pl.when(t == 0)
    def _():
        hcarry[...] = h0_ref[...]

    # ---- batched input-gate matmul for the whole chunk (off the sequential
    #      per-step critical path).  b_gi already folds b_ih + b_hh for r/z.
    # TODO(synk): nn.Dropout(p) in training mode would mask+rescale x here
    # (pltpu.prng_random_bits); implemented as identity (eval-mode semantics).
    x = x_ref[...].astype(jnp.bfloat16)                                    # (C, Hp)
    gi = jnp.dot(x, wih_ref[...], preferred_element_type=jnp.float32) + bgi_ref[...]
    gi_r = gi[:, 0 * Hp:1 * Hp]
    gi_z = gi[:, 1 * Hp:2 * Hp]
    gi_n = gi[:, 2 * Hp:3 * Hp]

    b_hn = bhn_ref[...]                                                    # (1, Hp)
    h = hcarry[...]                                                        # (1, Hp) f32

    # ---- sequential GRU recurrence: only h @ W_hh^T + gate math per step.
    for j in range(C):  # static unroll
        gh = jnp.dot(h.astype(jnp.bfloat16), whh_ref[...],
                     preferred_element_type=jnp.float32)                   # (1, 3Hp)
        r = jax.nn.sigmoid(gi_r[j:j + 1, :] + gh[:, 0 * Hp:1 * Hp])
        z = jax.nn.sigmoid(gi_z[j:j + 1, :] + gh[:, 1 * Hp:2 * Hp])
        n = jnp.tanh(gi_n[j:j + 1, :] + r * (gh[:, 2 * Hp:3 * Hp] + b_hn))
        h_new = (1.0 - z) * n + z * h
        # Mask steps past the true sequence length (ragged last chunk): the
        # carry (and therefore the final hidden) stays at step seq_len-1.
        h = jnp.where(t * C + j < seq_len, h_new, h)
        hseq[j:j + 1, :] = h

    hcarry[...] = h
    hfin_ref[...] = h

    # ---- deferred/batched vocab projection + log-softmax for the chunk:
    #      one (C,Hp)x(Hp,Vp) MXU pass instead of C single-row dots.  Padded
    #      vocab lanes carry a -1e30 bias so they contribute ~0 to the lse.
    h_chunk = hseq[...]                                                    # (C, Hp) f32
    logits = jnp.dot(h_chunk.astype(jnp.bfloat16), wout_ref[...],
                     preferred_element_type=jnp.float32) + bout_ref[...]   # (C, Vp)
    m = jnp.max(logits, axis=1, keepdims=True)
    lse = jnp.log(jnp.sum(jnp.exp(logits - m), axis=1, keepdims=True)) + m
    logp_ref[...] = logits - lse                                           # full-block store


# ----------------------------------------------------------------------------
# pallas_call wrapper
# ----------------------------------------------------------------------------
def _decode_pallas(x_seq, h0, kp, seq_len):
    Tp, Hp = x_seq.shape
    H3 = 3 * Hp
    Vp = kp["b_out"].shape[1]
    nt = Tp // _TCHUNK

    grid_spec = pltpu.PrefetchScalarGridSpec(
        num_scalar_prefetch=0,
        grid=(nt,),
        in_specs=[
            pl.BlockSpec((_TCHUNK, Hp), lambda t: (t, 0)),   # x chunk (auto-pipelined)
            pl.BlockSpec((1, Hp),       lambda t: (0, 0)),   # initial hidden
            pl.BlockSpec((Hp, H3),      lambda t: (0, 0)),   # W_ih^T, resident
            pl.BlockSpec((Hp, H3),      lambda t: (0, 0)),   # W_hh^T, resident
            pl.BlockSpec((1, H3),       lambda t: (0, 0)),   # b_gi (b_ih + b_hh for r/z)
            pl.BlockSpec((1, Hp),       lambda t: (0, 0)),   # b_hn
            pl.BlockSpec((Hp, Vp),      lambda t: (0, 0)),   # W_out^T, resident
            pl.BlockSpec((1, Vp),       lambda t: (0, 0)),   # b_out (-1e30 in pad lanes)
        ],
        out_specs=(
            pl.BlockSpec((_TCHUNK, Vp), lambda t: (t, 0)),   # log-probs chunk, lane-dense
            pl.BlockSpec((1, Hp),       lambda t: (0, 0)),   # final hidden
        ),
        scratch_shapes=[
            pltpu.VMEM((1, Hp), jnp.float32),        # hidden carry across chunks
            pltpu.VMEM((_TCHUNK, Hp), jnp.float32),  # per-chunk hidden rows for projection
        ],
    )

    return pl.pallas_call(
        partial(decoder_kernel, seq_len=seq_len),
        out_shape=(jax.ShapeDtypeStruct((Tp, Vp), jnp.float32),
                   jax.ShapeDtypeStruct((1, Hp), jnp.float32)),
        grid_spec=grid_spec,
        compiler_params=pltpu.CompilerParams(
            dimension_semantics=("arbitrary",),              # timestep chunks are sequential
            vmem_limit_bytes=48 * 1024 * 1024),
    )(x_seq, h0, kp["w_ih_t"], kp["w_hh_t"], kp["b_gi"], kp["b_hn"],
      kp["w_out_t"], kp["b_out"])


@partial(jax.jit, static_argnames=("hidden_size", "output_size"))
def decoder_rnn_decode(tokens, hidden, kparams, hidden_size, output_size):
    """Run T decoder steps (teacher-forced token sequence) in ONE pallas_call."""
    T = tokens.shape[0]
    Hp = kparams["w_hh_t"].shape[0]
    Tp = _round_up(T, _TCHUNK)

    # One batched embedding gather for the whole sequence (bf16 table in HBM;
    # the table never occupies kernel VMEM).
    x = jnp.take(kparams["embedding"], tokens.astype(jnp.int32), axis=0).astype(jnp.float32)
    x_seq = jnp.zeros((Tp, Hp), jnp.float32).at[:T].set(x)

    h0 = jnp.zeros((1, Hp), jnp.float32)
    h0 = h0.at[:, :hidden_size].set(hidden.reshape(1, hidden_size).astype(jnp.float32))

    logp_full, h_full = _decode_pallas(x_seq, h0, kparams, T)

    log_probs = logp_full[:T, :output_size]
    new_hidden = h_full[:, :hidden_size].reshape(1, 1, hidden_size)
    return log_probs, new_hidden


def decoder_rnn_forward(token, hidden, kparams, *, hidden_size, output_size):
    """Single-step forward, matching DecoderRNN.forward(input, hidden)."""
    tokens = jnp.atleast_1d(jnp.asarray(token, jnp.int32))
    return decoder_rnn_decode(tokens, hidden, kparams,
                              hidden_size=hidden_size, output_size=output_size)


# ----------------------------------------------------------------------------
# Parameters
# ----------------------------------------------------------------------------
def init_params(key, hidden_size, output_size):
    """PyTorch-layout f32 parameters (embedding (V,H); GRU (3H,H)/(3H,); Linear (V,H)/(V,))."""
    ks = jax.random.split(key, 7)
    s = 1.0 / jnp.sqrt(hidden_size)
    return {
        "embedding": jax.random.normal(ks[0], (output_size, hidden_size), jnp.float32),
        "w_ih": jax.random.uniform(ks[1], (3 * hidden_size, hidden_size), jnp.float32, -s, s),
        "w_hh": jax.random.uniform(ks[2], (3 * hidden_size, hidden_size), jnp.float32, -s, s),
        "b_ih": jax.random.uniform(ks[3], (3 * hidden_size,), jnp.float32, -s, s),
        "b_hh": jax.random.uniform(ks[4], (3 * hidden_size,), jnp.float32, -s, s),
        "w_out": jax.random.uniform(ks[5], (output_size, hidden_size), jnp.float32, -s, s),
        "b_out": jax.random.uniform(ks[6], (output_size,), jnp.float32, -s, s),
    }


def prepare_kernel_params(params):
    """One-time pad / transpose / cast so the per-call wrapper does zero layout work."""
    emb = params["embedding"]
    V, H = emb.shape
    Hp = _round_up(H, _LANE)
    Vp = _round_up(V, _LANE)

    def pad2(a, shape):
        out = jnp.zeros(shape, a.dtype)
        return out.at[:a.shape[0], :a.shape[1]].set(a)

    def gru_weight_t(w):
        # (3H, H) PyTorch [r; z; n] -> (Hp, 3Hp) bf16 with per-gate, lane-aligned blocks.
        blocks = []
        for g in range(3):
            blocks.append(pad2(w[g * H:(g + 1) * H, :].T, (Hp, Hp)))
        return jnp.concatenate(blocks, axis=1).astype(jnp.bfloat16)

    def pad_gate_bias(b):  # b: (3H,) -> (1, 3Hp) with zero-padded gate blocks
        blocks = []
        for g in range(3):
            blocks.append(jnp.zeros((1, Hp), jnp.float32).at[0, :H].set(b[g * H:(g + 1) * H]))
        return jnp.concatenate(blocks, axis=1)

    # Pre-sum b_ih + b_hh for the r and z gates; n's hidden bias stays separate
    # because it lives inside the r * (...) term.
    b_ih, b_hh = params["b_ih"], params["b_hh"]
    b_gi = jnp.concatenate([b_ih[:H] + b_hh[:H],
                            b_ih[H:2 * H] + b_hh[H:2 * H],
                            b_ih[2 * H:]])
    b_gi = pad_gate_bias(b_gi)
    b_hn = jnp.zeros((1, Hp), jnp.float32).at[0, :H].set(b_hh[2 * H:])

    # Padded vocab lanes get a -1e30 bias so log-softmax ignores them.
    b_out = jnp.full((1, Vp), -1e30, jnp.float32).at[0, :V].set(params["b_out"])

    return {
        "embedding": pad2(emb, (V, Hp)).astype(jnp.bfloat16),               # bf16 table (HBM)
        "w_ih_t": gru_weight_t(params["w_ih"]),                             # (Hp, 3Hp) bf16
        "w_hh_t": gru_weight_t(params["w_hh"]),                             # (Hp, 3Hp) bf16
        "b_gi": b_gi,                                                       # (1, 3Hp) f32
        "b_hn": b_hn,                                                       # (1, Hp)  f32
        "w_out_t": pad2(params["w_out"].T, (Hp, Vp)).astype(jnp.bfloat16),  # (Hp, Vp) bf16
        "b_out": b_out,                                                     # (1, Vp)  f32
    }


# ----------------------------------------------------------------------------
# Pure-JAX reference (same bf16-weight / f32-accumulate numerics)
# ----------------------------------------------------------------------------
def reference_decode(tokens, hidden, params):
    H = params["w_hh"].shape[1]
    h = hidden.reshape(1, H).astype(jnp.float32)
    wih_t = params["w_ih"].T.astype(jnp.bfloat16)
    whh_t = params["w_hh"].T.astype(jnp.bfloat16)
    wout_t = params["w_out"].T.astype(jnp.bfloat16)
    outs = []
    for tok in list(tokens):
        x = params["embedding"][tok].reshape(1, H).astype(jnp.bfloat16)
        gi = jnp.dot(x, wih_t, preferred_element_type=jnp.float32) + params["b_ih"]
        gh = jnp.dot(h.astype(jnp.bfloat16), whh_t, preferred_element_type=jnp.float32) + params["b_hh"]
        r = jax.nn.sigmoid(gi[:, :H] + gh[:, :H])
        z = jax.nn.sigmoid(gi[:, H:2 * H] + gh[:, H:2 * H])
        n = jnp.tanh(gi[:, 2 * H:] + r * gh[:, 2 * H:])
        h = (1.0 - z) * n + z * h
        logits = jnp.dot(h.astype(jnp.bfloat16), wout_t, preferred_element_type=jnp.float32) + params["b_out"]
        outs.append(jax.nn.log_softmax(logits, axis=1))
    return jnp.concatenate(outs, axis=0), h.reshape(1, 1, H)


# ----------------------------------------------------------------------------
if __name__ == "__main__":
    # Small shapes consistent with the module (real model: hidden=512, V=vocab).
    # Deliberately not lane multiples to exercise the H/V padding + masking path,
    # and T not a multiple of 8 to exercise the ragged last chunk.
    hidden_size = 96
    output_size = 200   # vocabulary size

    key = jax.random.PRNGKey(0)
    pkey, hkey, tkey = jax.random.split(key, 3)
    params = init_params(pkey, hidden_size, output_size)
    kparams = prepare_kernel_params(params)     # one-time layout work

    hidden = jax.random.normal(hkey, (1, 1, hidden_size), jnp.float32)

    # --- single-step forward: exact DecoderRNN.forward semantics ---------------
    token = jnp.array(5, dtype=jnp.int32)
    log_probs, new_hidden = decoder_rnn_forward(
        token, hidden, kparams, hidden_size=hidden_size, output_size=output_size)
    jax.block_until_ready((log_probs, new_hidden))
    assert log_probs.shape == (1, output_size)
    assert new_hidden.shape == (1, 1, hidden_size)
    assert jnp.allclose(jnp.sum(jnp.exp(log_probs)), 1.0, atol=1e-3)

    # --- multi-step decode: whole token sequence in one pallas_call ------------
    T = 12   # 2 chunks of 8, second chunk ragged (4 masked steps)
    tokens = jax.random.randint(tkey, (T,), 0, output_size, dtype=jnp.int32)
    logp_seq, h_seq = decoder_rnn_decode(
        tokens, hidden, kparams, hidden_size=hidden_size, output_size=output_size)
    jax.block_until_ready((logp_seq, h_seq))
    assert logp_seq.shape == (T, output_size)
    assert h_seq.shape == (1, 1, hidden_size)

    ref_logp, ref_h = reference_decode(tokens, hidden, params)
    assert jnp.allclose(logp_seq, ref_logp, atol=2e-2), float(jnp.max(jnp.abs(logp_seq - ref_logp)))
    assert jnp.allclose(h_seq, ref_h, atol=2e-2), float(jnp.max(jnp.abs(h_seq - ref_h)))
    assert jnp.allclose(jnp.sum(jnp.exp(logp_seq), axis=1), 1.0, atol=1e-3)

    print("KERNEL_OK")
</pallas_src>

<mosaic_0001>
module attributes {stable_mosaic.version = 11 : i64} {
  func.func @decoder_kernel(%arg0: i32, %arg1: memref<8x128xf32, #tpu.memory_space<vmem>>, %arg2: memref<1x128xf32, #tpu.memory_space<vmem>>, %arg3: memref<128x384xbf16, #tpu.memory_space<vmem>>, %arg4: memref<128x384xbf16, #tpu.memory_space<vmem>>, %arg5: memref<1x384xf32, #tpu.memory_space<vmem>>, %arg6: memref<1x128xf32, #tpu.memory_space<vmem>>, %arg7: memref<128x256xbf16, #tpu.memory_space<vmem>>, %arg8: memref<1x256xf32, #tpu.memory_space<vmem>>, %arg9: memref<8x256xf32, #tpu.memory_space<vmem>>, %arg10: memref<1x128xf32, #tpu.memory_space<vmem>>, %arg11: memref<1x128xf32, #tpu.memory_space<vmem>>, %arg12: memref<8x128xf32, #tpu.memory_space<vmem>>) attributes {dimension_semantics = [#tpu.dimension_semantics<arbitrary>], iteration_bounds = array<i64: 1>, scalar_prefetch = 0 : i64, scratch_operands = 2 : i64, tpu.core_type = #tpu.core_type<tc>, window_params = [{transform_indices = @transform_0, window_bounds = array<i64: 8, 128>}, {pipeline_mode = #tpu.pipeline_mode<synchronous>, transform_indices = @transform_1, window_bounds = array<i64: 1, 128>}, {pipeline_mode = #tpu.pipeline_mode<synchronous>, transform_indices = @transform_2, window_bounds = array<i64: 128, 384>}, {pipeline_mode = #tpu.pipeline_mode<synchronous>, transform_indices = @transform_3, window_bounds = array<i64: 128, 384>}, {pipeline_mode = #tpu.pipeline_mode<synchronous>, transform_indices = @transform_4, window_bounds = array<i64: 1, 384>}, {pipeline_mode = #tpu.pipeline_mode<synchronous>, transform_indices = @transform_5, window_bounds = array<i64: 1, 128>}, {pipeline_mode = #tpu.pipeline_mode<synchronous>, transform_indices = @transform_6, window_bounds = array<i64: 128, 256>}, {pipeline_mode = #tpu.pipeline_mode<synchronous>, transform_indices = @transform_7, window_bounds = array<i64: 1, 256>}, {transform_indices = @transform_8, window_bounds = array<i64: 8, 256>}, {pipeline_mode = #tpu.pipeline_mode<synchronous>, transform_indices = @transform_9, window_bounds = array<i64: 1, 128>}]} {
    %c0_i32 = arith.constant 0 : i32
    %0 = arith.cmpi eq, %arg0, %c0_i32 : i32
    %1 = arith.extui %0 : i1 to i32
    %c0_i32_0 = arith.constant 0 : i32
    %2 = arith.cmpi ne, %1, %c0_i32_0 : i32
    scf.if %2 {
      %c0_98 = arith.constant 0 : index
      %c0_99 = arith.constant 0 : index
      %316 = vector.load %arg2[%c0_98, %c0_99] : memref<1x128xf32, #tpu.memory_space<vmem>>, vector<1x128xf32>
      %c0_100 = arith.constant 0 : index
      %c0_101 = arith.constant 0 : index
      %317 = vector.load %arg11[%c0_100, %c0_101] : memref<1x128xf32, #tpu.memory_space<vmem>>, vector<1x128xf32>
      tpu.vector_store %arg11[%c0_100, %c0_101], %316 {strides = array<i32>} : memref<1x128xf32, #tpu.memory_space<vmem>>, vector<1x128xf32>,
    } else {
    }
    %c0 = arith.constant 0 : index
    %c0_1 = arith.constant 0 : index
    %3 = vector.load %arg1[%c0, %c0_1] : memref<8x128xf32, #tpu.memory_space<vmem>>, vector<8x128xf32>
    %4 = arith.truncf %3 : vector<8x128xf32> to vector<8x128xbf16>
    %c0_2 = arith.constant 0 : index
    %c0_3 = arith.constant 0 : index
    %5 = vector.load %arg3[%c0_2, %c0_3] : memref<128x384xbf16, #tpu.memory_space<vmem>>, vector<128x384xbf16>
    %cst = arith.constant dense<0.000000e+00> : vector<8x384xf32>
    %6 = tpu.matmul %4, %5, %cst {dimension_numbers = #tpu.dot_dimension_numbers<[1], [0], [0], [1], [0, 0, 1, 1], [], []>} : vector<8x128xbf16>, vector<128x384xbf16>, vector<8x384xf32> -> vector<8x384xf32>
    %c0_4 = arith.constant 0 : index
    %c0_5 = arith.constant 0 : index
    %7 = vector.load %arg5[%c0_4, %c0_5] : memref<1x384xf32, #tpu.memory_space<vmem>>, vector<1x384xf32>
    %8 = vector.broadcast %7 : vector<1x384xf32> to vector<8x384xf32>
    %9 = arith.addf %6, %8 : vector<8x384xf32>
    %10 = vector.extract_strided_slice %9 {offsets = [0, 0], sizes = [8, 128], strides = [1, 1]} : vector<8x384xf32> to vector<8x128xf32>
    %11 = vector.extract_strided_slice %9 {offsets = [0, 128], sizes = [8, 128], strides = [1, 1]} : vector<8x384xf32> to vector<8x128xf32>
    %12 = vector.extract_strided_slice %9 {offsets = [0, 256], sizes = [8, 128], strides = [1, 1]} : vector<8x384xf32> to vector<8x128xf32>
    %c0_6 = arith.constant 0 : index
    %c0_7 = arith.constant 0 : index
    %13 = vector.load %arg6[%c0_6, %c0_7] : memref<1x128xf32, #tpu.memory_space<vmem>>, vector<1x128xf32>
    %c0_8 = arith.constant 0 : index
    %c0_9 = arith.constant 0 : index
    %14 = vector.load %arg11[%c0_8, %c0_9] : memref<1x128xf32, #tpu.memory_space<vmem>>, vector<1x128xf32>
    %15 = arith.truncf %14 : vector<1x128xf32> to vector<1x128xbf16>
    %c0_10 = arith.constant 0 : index
    %c0_11 = arith.constant 0 : index
    %16 = vector.load %arg4[%c0_10, %c0_11] : memref<128x384xbf16, #tpu.memory_space<vmem>>, vector<128x384xbf16>
    %cst_12 = arith.constant dense<0.000000e+00> : vector<1x384xf32>
    %17 = tpu.matmul %15, %16, %cst_12 {dimension_numbers = #tpu.dot_dimension_numbers<[1], [0], [0], [1], [0, 0, 1, 1], [], []>} : vector<1x128xbf16>, vector<128x384xbf16>, vector<1x384xf32> -> vector<1x384xf32>
    %18 = vector.extract_strided_slice %10 {offsets = [0, 0], sizes = [1, 128], strides = [1, 1]} : vector<8x128xf32> to vector<1x128xf32>
    %19 = vector.extract_strided_slice %17 {offsets = [0, 0], sizes = [1, 128], strides = [1, 1]} : vector<1x384xf32> to vector<1x128xf32>
    %20 = arith.addf %18, %19 : vector<1x128xf32>
    %21 = arith.negf %20 : vector<1x128xf32>
    %22 = math.exp %21 : vector<1x128xf32>
    %cst_13 = arith.constant 1.000000e+00 : f32
    %23 = vector.broadcast %cst_13 : f32 to vector<1x128xf32>
    %24 = arith.addf %23, %22 : vector<1x128xf32>
    %25 = arith.divf %23, %24 : vector<1x128xf32>
    %26 = vector.extract_strided_slice %11 {offsets = [0, 0], sizes = [1, 128], strides = [1, 1]} : vector<8x128xf32> to vector<1x128xf32>
    %27 = vector.extract_strided_slice %17 {offsets = [0, 128], sizes = [1, 128], strides = [1, 1]} : vector<1x384xf32> to vector<1x128xf32>
    %28 = arith.addf %26, %27 : vector<1x128xf32>
    %29 = arith.negf %28 : vector<1x128xf32>
    %30 = math.exp %29 : vector<1x128xf32>
    %cst_14 = arith.constant 1.000000e+00 : f32
    %31 = vector.broadcast %cst_14 : f32 to vector<1x128xf32>
    %32 = arith.addf %31, %30 : vector<1x128xf32>
    %33 = arith.divf %31, %32 : vector<1x128xf32>
    %34 = vector.extract_strided_slice %12 {offsets = [0, 0], sizes = [1, 128], strides = [1, 1]} : vector<8x128xf32> to vector<1x128xf32>
    %35 = vector.extract_strided_slice %17 {offsets = [0, 256], sizes = [1, 128], strides = [1, 1]} : vector<1x384xf32> to vector<1x128xf32>
    %36 = arith.addf %35, %13 : vector<1x128xf32>
    %37 = arith.mulf %25, %36 : vector<1x128xf32>
    %38 = arith.addf %34, %37 : vector<1x128xf32>
    %39 = math.tanh %38 : vector<1x128xf32>
    %cst_15 = arith.constant 1.000000e+00 : f32
    %40 = vector.broadcast %cst_15 : f32 to vector<1x128xf32>
    %41 = arith.subf %40, %33 : vector<1x128xf32>
    %42 = arith.mulf %41, %39 : vector<1x128xf32>
    %43 = arith.mulf %33, %14 : vector<1x128xf32>
    %44 = arith.addf %42, %43 : vector<1x128xf32>
    %c8_i32 = arith.constant 8 : i32
    %45 = arith.muli %arg0, %c8_i32 : i32
    %c0_i32_16 = arith.constant 0 : i32
    %46 = arith.addi %45, %c0_i32_16 : i32
    %c1_i32 = arith.constant 1 : i32
    %47 = arith.cmpi slt, %46, %c1_i32 : i32
    %48 = arith.select %47, %44, %14 : vector<1x128xf32>
    %c0_17 = arith.constant 0 : index
    %c0_18 = arith.constant 0 : index
    %49 = vector.load %arg12[%c0_17, %c0_18] : memref<8x128xf32, #tpu.memory_space<vmem>>, vector<1x128xf32>
    tpu.vector_store %arg12[%c0_17, %c0_18], %48 {strides = array<i32>} : memref<8x128xf32, #tpu.memory_space<vmem>>, vector<1x128xf32>,
    %50 = arith.truncf %48 : vector<1x128xf32> to vector<1x128xbf16>
    %c0_19 = arith.constant 0 : index
    %c0_20 = arith.constant 0 : index
    %51 = vector.load %arg4[%c0_19, %c0_20] : memref<128x384xbf16, #tpu.memory_space<vmem>>, vector<128x384xbf16>
    %cst_21 = arith.constant dense<0.000000e+00> : vector<1x384xf32>
    %52 = tpu.matmul %50, %51, %cst_21 {dimension_numbers = #tpu.dot_dimension_numbers<[1], [0], [0], [1], [0, 0, 1, 1], [], []>} : vector<1x128xbf16>, vector<128x384xbf16>, vector<1x384xf32> -> vector<1x384xf32>
    %53 = vector.extract_strided_slice %10 {offsets = [1, 0], sizes = [1, 128], strides = [1, 1]} : vector<8x128xf32> to vector<1x128xf32>
    %54 = vector.extract_strided_slice %52 {offsets = [0, 0], sizes = [1, 128], strides = [1, 1]} : vector<1x384xf32> to vector<1x128xf32>
    %55 = arith.addf %53, %54 : vector<1x128xf32>
    %56 = arith.negf %55 : vector<1x128xf32>
    %57 = math.exp %56 : vector<1x128xf32>
    %cst_22 = arith.constant 1.000000e+00 : f32
    %58 = vector.broadcast %cst_22 : f32 to vector<1x128xf32>
    %59 = arith.addf %58, %57 : vector<1x128xf32>
    %60 = arith.divf %58, %59 : vector<1x128xf32>
    %61 = vector.extract_strided_slice %11 {offsets = [1, 0], sizes = [1, 128], strides = [1, 1]} : vector<8x128xf32> to vector<1x128xf32>
    %62 = vector.extract_strided_slice %52 {offsets = [0, 128], sizes = [1, 128], strides = [1, 1]} : vector<1x384xf32> to vector<1x128xf32>
    %63 = arith.addf %61, %62 : vector<1x128xf32>
    %64 = arith.negf %63 : vector<1x128xf32>
    %65 = math.exp %64 : vector<1x128xf32>
    %cst_23 = arith.constant 1.000000e+00 : f32
    %66 = vector.broadcast %cst_23 : f32 to vector<1x128xf32>
    %67 = arith.addf %66, %65 : vector<1x128xf32>
    %68 = arith.divf %66, %67 : vector<1x128xf32>
    %69 = vector.extract_strided_slice %12 {offsets = [1, 0], sizes = [1, 128], strides = [1, 1]} : vector<8x128xf32> to vector<1x128xf32>
    %70 = vector.extract_strided_slice %52 {offsets = [0, 256], sizes = [1, 128], strides = [1, 1]} : vector<1x384xf32> to vector<1x128xf32>
    %71 = arith.addf %70, %13 : vector<1x128xf32>
    %72 = arith.mulf %60, %71 : vector<1x128xf32>
    %73 = arith.addf %69, %72 : vector<1x128xf32>
    %74 = math.tanh %73 : vector<1x128xf32>
    %cst_24 = arith.constant 1.000000e+00 : f32
    %75 = vector.broadcast %cst_24 : f32 to vector<1x128xf32>
    %76 = arith.subf %75, %68 : vector<1x128xf32>
    %77 = arith.mulf %76, %74 : vector<1x128xf32>
    %78 = arith.mulf %68, %48 : vector<1x128xf32>
    %79 = arith.addf %77, %78 : vector<1x128xf32>
    %c8_i32_25 = arith.constant 8 : i32
    %80 = arith.muli %arg0, %c8_i32_25 : i32
    %c1_i32_26 = arith.constant 1 : i32
    %81 = arith.addi %80, %c1_i32_26 : i32
    %c1_i32_27 = arith.constant 1 : i32
    %82 = arith.cmpi slt, %81, %c1_i32_27 : i32
    %83 = arith.select %82, %79, %48 : vector<1x128xf32>
    %c1 = arith.constant 1 : index
    %c0_28 = arith.constant 0 : index
    %84 = vector.load %arg12[%c1, %c0_28] : memref<8x128xf32, #tpu.memory_space<vmem>>, vector<1x128xf32>
    tpu.vector_store %arg12[%c1, %c0_28], %83 {strides = array<i32>} : memref<8x128xf32, #tpu.memory_space<vmem>>, vector<1x128xf32>,
    %85 = arith.truncf %83 : vector<1x128xf32> to vector<1x128xbf16>
    %c0_29 = arith.constant 0 : index
    %c0_30 = arith.constant 0 : index
    %86 = vector.load %arg4[%c0_29, %c0_30] : memref<128x384xbf16, #tpu.memory_space<vmem>>, vector<128x384xbf16>
    %cst_31 = arith.constant dense<0.000000e+00> : vector<1x384xf32>
    %87 = tpu.matmul %85, %86, %cst_31 {dimension_numbers = #tpu.dot_dimension_numbers<[1], [0], [0], [1], [0, 0, 1, 1], [], []>} : vector<1x128xbf16>, vector<128x384xbf16>, vector<1x384xf32> -> vector<1x384xf32>
    %88 = vector.extract_strided_slice %10 {offsets = [2, 0], sizes = [1, 128], strides = [1, 1]} : vector<8x128xf32> to vector<1x128xf32>
    %89 = vector.extract_strided_slice %87 {offsets = [0, 0], sizes = [1, 128], strides = [1, 1]} : vector<1x384xf32> to vector<1x128xf32>
    %90 = arith.addf %88, %89 : vector<1x128xf32>
    %91 = arith.negf %90 : vector<1x128xf32>
    %92 = math.exp %91 : vector<1x128xf32>
    %cst_32 = arith.constant 1.000000e+00 : f32
    %93 = vector.broadcast %cst_32 : f32 to vector<1x128xf32>
    %94 = arith.addf %93, %92 : vector<1x128xf32>
    %95 = arith.divf %93, %94 : vector<1x128xf32>
    %96 = vector.extract_strided_slice %11 {offsets = [2, 0], sizes = [1, 128], strides = [1, 1]} : vector<8x128xf32> to vector<1x128xf32>
    %97 = vector.extract_strided_slice %87 {offsets = [0, 128], sizes = [1, 128], strides = [1, 1]} : vector<1x384xf32> to vector<1x128xf32>
    %98 = arith.addf %96, %97 : vector<1x128xf32>
    %99 = arith.negf %98 : vector<1x128xf32>
    %100 = math.exp %99 : vector<1x128xf32>
    %cst_33 = arith.constant 1.000000e+00 : f32
    %101 = vector.broadcast %cst_33 : f32 to vector<1x128xf32>
    %102 = arith.addf %101, %100 : vector<1x128xf32>
    %103 = arith.divf %101, %102 : vector<1x128xf32>
    %104 = vector.extract_strided_slice %12 {offsets = [2, 0], sizes = [1, 128], strides = [1, 1]} : vector<8x128xf32> to vector<1x128xf32>
    %105 = vector.extract_strided_slice %87 {offsets = [0, 256], sizes = [1, 128], strides = [1, 1]} : vector<1x384xf32> to vector<1x128xf32>
    %106 = arith.addf %105, %13 : vector<1x128xf32>
    %107 = arith.mulf %95, %106 : vector<1x128xf32>
    %108 = arith.addf %104, %107 : vector<1x128xf32>
    %109 = math.tanh %108 : vector<1x128xf32>
    %cst_34 = arith.constant 1.000000e+00 : f32
    %110 = vector.broadcast %cst_34 : f32 to vector<1x128xf32>
    %111 = arith.subf %110, %103 : vector<1x128xf32>
    %112 = arith.mulf %111, %109 : vector<1x128xf32>
    %113 = arith.mulf %103, %83 : vector<1x128xf32>
    %114 = arith.addf %112, %113 : vector<1x128xf32>
    %c8_i32_35 = arith.constant 8 : i32
    %115 = arith.muli %arg0, %c8_i32_35 : i32
    %c2_i32 = arith.constant 2 : i32
    %116 = arith.addi %115, %c2_i32 : i32
    %c1_i32_36 = arith.constant 1 : i32
    %117 = arith.cmpi slt, %116, %c1_i32_36 : i32
    %118 = arith.select %117, %114, %83 : vector<1x128xf32>
    %c2 = arith.constant 2 : index
    %c0_37 = arith.constant 0 : index
    %119 = vector.load %arg12[%c2, %c0_37] : memref<8x128xf32, #tpu.memory_space<vmem>>, vector<1x128xf32>
    tpu.vector_store %arg12[%c2, %c0_37], %118 {strides = array<i32>} : memref<8x128xf32, #tpu.memory_space<vmem>>, vector<1x128xf32>,
    %120 = arith.truncf %118 : vector<1x128xf32> to vector<1x128xbf16>
    %c0_38 = arith.constant 0 : index
    %c0_39 = arith.constant 0 : index
    %121 = vector.load %arg4[%c0_38, %c0_39] : memref<128x384xbf16, #tpu.memory_space<vmem>>, vector<128x384xbf16>
    %cst_40 = arith.constant dense<0.000000e+00> : vector<1x384xf32>
    %122 = tpu.matmul %120, %121, %cst_40 {dimension_numbers = #tpu.dot_dimension_numbers<[1], [0], [0], [1], [0, 0, 1, 1], [], []>} : vector<1x128xbf16>, vector<128x384xbf16>, vector<1x384xf32> -> vector<1x384xf32>
    %123 = vector.extract_strided_slice %10 {offsets = [3, 0], sizes = [1, 128], strides = [1, 1]} : vector<8x128xf32> to vector<1x128xf32>
    %124 = vector.extract_strided_slice %122 {offsets = [0, 0], sizes = [1, 128], strides = [1, 1]} : vector<1x384xf32> to vector<1x128xf32>
    %125 = arith.addf %123, %124 : vector<1x128xf32>
    %126 = arith.negf %125 : vector<1x128xf32>
    %127 = math.exp %126 : vector<1x128xf32>
    %cst_41 = arith.constant 1.000000e+00 : f32
    %128 = vector.broadcast %cst_41 : f32 to vector<1x128xf32>
    %129 = arith.addf %128, %127 : vector<1x128xf32>
    %130 = arith.divf %128, %129 : vector<1x128xf32>
    %131 = vector.extract_strided_slice %11 {offsets = [3, 0], sizes = [1, 128], strides = [1, 1]} : vector<8x128xf32> to vector<1x128xf32>
    %132 = vector.extract_strided_slice %122 {offsets = [0, 128], sizes = [1, 128], strides = [1, 1]} : vector<1x384xf32> to vector<1x128xf32>
    %133 = arith.addf %131, %132 : vector<1x128xf32>
    %134 = arith.negf %133 : vector<1x128xf32>
    %135 = math.exp %134 : vector<1x128xf32>
    %cst_42 = arith.constant 1.000000e+00 : f32
    %136 = vector.broadcast %cst_42 : f32 to vector<1x128xf32>
    %137 = arith.addf %136, %135 : vector<1x128xf32>
    %138 = arith.divf %136, %137 : vector<1x128xf32>
    %139 = vector.extract_strided_slice %12 {offsets = [3, 0], sizes = [1, 128], strides = [1, 1]} : vector<8x128xf32> to vector<1x128xf32>
    %140 = vector.extract_strided_slice %122 {offsets = [0, 256], sizes = [1, 128], strides = [1, 1]} : vector<1x384xf32> to vector<1x128xf32>
    %141 = arith.addf %140, %13 : vector<1x128xf32>
    %142 = arith.mulf %130, %141 : vector<1x128xf32>
    %143 = arith.addf %139, %142 : vector<1x128xf32>
    %144 = math.tanh %143 : vector<1x128xf32>
    %cst_43 = arith.constant 1.000000e+00 : f32
    %145 = vector.broadcast %cst_43 : f32 to vector<1x128xf32>
    %146 = arith.subf %145, %138 : vector<1x128xf32>
    %147 = arith.mulf %146, %144 : vector<1x128xf32>
    %148 = arith.mulf %138, %118 : vector<1x128xf32>
    %149 = arith.addf %147, %148 : vector<1x128xf32>
    %c8_i32_44 = arith.constant 8 : i32
    %150 = arith.muli %arg0, %c8_i32_44 : i32
    %c3_i32 = arith.constant 3 : i32
    %151 = arith.addi %150, %c3_i32 : i32
    %c1_i32_45 = arith.constant 1 : i32
    %152 = arith.cmpi slt, %151, %c1_i32_45 : i32
    %153 = arith.select %152, %149, %118 : vector<1x128xf32>
    %c3 = arith.constant 3 : index
    %c0_46 = arith.constant 0 : index
    %154 = vector.load %arg12[%c3, %c0_46] : memref<8x128xf32, #tpu.memory_space<vmem>>, vector<1x128xf32>
    tpu.vector_store %arg12[%c3, %c0_46], %153 {strides = array<i32>} : memref<8x128xf32, #tpu.memory_space<vmem>>, vector<1x128xf32>,
    %155 = arith.truncf %153 : vector<1x128xf32> to vector<1x128xbf16>
    %c0_47 = arith.constant 0 : index
    %c0_48 = arith.constant 0 : index
    %156 = vector.load %arg4[%c0_47, %c0_48] : memref<128x384xbf16, #tpu.memory_space<vmem>>, vector<128x384xbf16>
    %cst_49 = arith.constant dense<0.000000e+00> : vector<1x384xf32>
    %157 = tpu.matmul %155, %156, %cst_49 {dimension_numbers = #tpu.dot_dimension_numbers<[1], [0], [0], [1], [0, 0, 1, 1], [], []>} : vector<1x128xbf16>, vector<128x384xbf16>, vector<1x384xf32> -> vector<1x384xf32>
    %158 = vector.extract_strided_slice %10 {offsets = [4, 0], sizes = [1, 128], strides = [1, 1]} : vector<8x128xf32> to vector<1x128xf32>
    %159 = vector.extract_strided_slice %157 {offsets = [0, 0], sizes = [1, 128], strides = [1, 1]} : vector<1x384xf32> to vector<1x128xf32>
    %160 = arith.addf %158, %159 : vector<1x128xf32>
    %161 = arith.negf %160 : vector<1x128xf32>
    %162 = math.exp %161 : vector<1x128xf32>
    %cst_50 = arith.constant 1.000000e+00 : f32
    %163 = vector.broadcast %cst_50 : f32 to vector<1x128xf32>
    %164 = arith.addf %163, %162 : vector<1x128xf32>
    %165 = arith.divf %163, %164 : vector<1x128xf32>
    %166 = vector.extract_strided_slice %11 {offsets = [4, 0], sizes = [1, 128], strides = [1, 1]} : vector<8x128xf32> to vector<1x128xf32>
    %167 = vector.extract_strided_slice %157 {offsets = [0, 128], sizes = [1, 128], strides = [1, 1]} : vector<1x384xf32> to vector<1x128xf32>
    %168 = arith.addf %166, %167 : vector<1x128xf32>
    %169 = arith.negf %168 : vector<1x128xf32>
    %170 = math.exp %169 : vector<1x128xf32>
    %cst_51 = arith.constant 1.000000e+00 : f32
    %171 = vector.broadcast %cst_51 : f32 to vector<1x128xf32>
    %172 = arith.addf %171, %170 : vector<1x128xf32>
    %173 = arith.divf %171, %172 : vector<1x128xf32>
    %174 = vector.extract_strided_slice %12 {offsets = [4, 0], sizes = [1, 128], strides = [1, 1]} : vector<8x128xf32> to vector<1x128xf32>
    %175 = vector.extract_strided_slice %157 {offsets = [0, 256], sizes = [1, 128], strides = [1, 1]} : vector<1x384xf32> to vector<1x128xf32>
    %176 = arith.addf %175, %13 : vector<1x128xf32>
    %177 = arith.mulf %165, %176 : vector<1x128xf32>
    %178 = arith.addf %174, %177 : vector<1x128xf32>
    %179 = math.tanh %178 : vector<1x128xf32>
    %cst_52 = arith.constant 1.000000e+00 : f32
    %180 = vector.broadcast %cst_52 : f32 to vector<1x128xf32>
    %181 = arith.subf %180, %173 : vector<1x128xf32>
    %182 = arith.mulf %181, %179 : vector<1x128xf32>
    %183 = arith.mulf %173, %153 : vector<1x128xf32>
    %184 = arith.addf %182, %183 : vector<1x128xf32>
    %c8_i32_53 = arith.constant 8 : i32
    %185 = arith.muli %arg0, %c8_i32_53 : i32
    %c4_i32 = arith.constant 4 : i32
    %186 = arith.addi %185, %c4_i32 : i32
    %c1_i32_54 = arith.constant 1 : i32
    %187 = arith.cmpi slt, %186, %c1_i32_54 : i32
    %188 = arith.select %187, %184, %153 : vector<1x128xf32>
    %c4 = arith.constant 4 : index
    %c0_55 = arith.constant 0 : index
    %189 = vector.load %arg12[%c4, %c0_55] : memref<8x128xf32, #tpu.memory_space<vmem>>, vector<1x128xf32>
    tpu.vector_store %arg12[%c4, %c0_55], %188 {strides = array<i32>} : memref<8x128xf32, #tpu.memory_space<vmem>>, vector<1x128xf32>,
    %190 = arith.truncf %188 : vector<1x128xf32> to vector<1x128xbf16>
    %c0_56 = arith.constant 0 : index
    %c0_57 = arith.constant 0 : index
    %191 = vector.load %arg4[%c0_56, %c0_57] : memref<128x384xbf16, #tpu.memory_space<vmem>>, vector<128x384xbf16>
    %cst_58 = arith.constant dense<0.000000e+00> : vector<1x384xf32>
    %192 = tpu.matmul %190, %191, %cst_58 {dimension_numbers = #tpu.dot_dimension_numbers<[1], [0], [0], [1], [0, 0, 1, 1], [], []>} : vector<1x128xbf16>, vector<128x384xbf16>, vector<1x384xf32> -> vector<1x384xf32>
    %193 = vector.extract_strided_slice %10 {offsets = [5, 0], sizes = [1, 128], strides = [1, 1]} : vector<8x128xf32> to vector<1x128xf32>
    %194 = vector.extract_strided_slice %192 {offsets = [0, 0], sizes = [1, 128], strides = [1, 1]} : vector<1x384xf32> to vector<1x128xf32>
    %195 = arith.addf %193, %194 : vector<1x128xf32>
    %196 = arith.negf %195 : vector<1x128xf32>
    %197 = math.exp %196 : vector<1x128xf32>
    %cst_59 = arith.constant 1.000000e+00 : f32
    %198 = vector.broadcast %cst_59 : f32 to vector<1x128xf32>
    %199 = arith.addf %198, %197 : vector<1x128xf32>
    %200 = arith.divf %198, %199 : vector<1x128xf32>
    %201 = vector.extract_strided_slice %11 {offsets = [5, 0], sizes = [1, 128], strides = [1, 1]} : vector<8x128xf32> to vector<1x128xf32>
    %202 = vector.extract_strided_slice %192 {offsets = [0, 128], sizes = [1, 128], strides = [1, 1]} : vector<1x384xf32> to vector<1x128xf32>
    %203 = arith.addf %201, %202 : vector<1x128xf32>
    %204 = arith.negf %203 : vector<1x128xf32>
    %205 = math.exp %204 : vector<1x128xf32>
    %cst_60 = arith.constant 1.000000e+00 : f32
    %206 = vector.broadcast %cst_60 : f32 to vector<1x128xf32>
    %207 = arith.addf %206, %205 : vector<1x128xf32>
    %208 = arith.divf %206, %207 : vector<1x128xf32>
    %209 = vector.extract_strided_slice %12 {offsets = [5, 0], sizes = [1, 128], strides = [1, 1]} : vector<8x128xf32> to vector<1x128xf32>
    %210 = vector.extract_strided_slice %192 {offsets = [0, 256], sizes = [1, 128], strides = [1, 1]} : vector<1x384xf32> to vector<1x128xf32>
    %211 = arith.addf %210, %13 : vector<1x128xf32>
    %212 = arith.mulf %200, %211 : vector<1x128xf32>
    %213 = arith.addf %209, %212 : vector<1x128xf32>
    %214 = math.tanh %213 : vector<1x128xf32>
    %cst_61 = arith.constant 1.000000e+00 : f32
    %215 = vector.broadcast %cst_61 : f32 to vector<1x128xf32>
    %216 = arith.subf %215, %208 : vector<1x128xf32>
    %217 = arith.mulf %216, %214 : vector<1x128xf32>
    %218 = arith.mulf %208, %188 : vector<1x128xf32>
    %219 = arith.addf %217, %218 : vector<1x128xf32>
    %c8_i32_62 = arith.constant 8 : i32
    %220 = arith.muli %arg0, %c8_i32_62 : i32
    %c5_i32 = arith.constant 5 : i32
    %221 = arith.addi %220, %c5_i32 : i32
    %c1_i32_63 = arith.constant 1 : i32
    %222 = arith.cmpi slt, %221, %c1_i32_63 : i32
    %223 = arith.select %222, %219, %188 : vector<1x128xf32>
    %c5 = arith.constant 5 : index
    %c0_64 = arith.constant 0 : index
    %224 = vector.load %arg12[%c5, %c0_64] : memref<8x128xf32, #tpu.memory_space<vmem>>, vector<1x128xf32>
    tpu.vector_store %arg12[%c5, %c0_64], %223 {strides = array<i32>} : memref<8x128xf32, #tpu.memory_space<vmem>>, vector<1x128xf32>,
    %225 = arith.truncf %223 : vector<1x128xf32> to vector<1x128xbf16>
    %c0_65 = arith.constant 0 : index
    %c0_66 = arith.constant 0 : index
    %226 = vector.load %arg4[%c0_65, %c0_66] : memref<128x384xbf16, #tpu.memory_space<vmem>>, vector<128x384xbf16>
    %cst_67 = arith.constant dense<0.000000e+00> : vector<1x384xf32>
    %227 = tpu.matmul %225, %226, %cst_67 {dimension_numbers = #tpu.dot_dimension_numbers<[1], [0], [0], [1], [0, 0, 1, 1], [], []>} : vector<1x128xbf16>, vector<128x384xbf16>, vector<1x384xf32> -> vector<1x384xf32>
    %228 = vector.extract_strided_slice %10 {offsets = [6, 0], sizes = [1, 128], strides = [1, 1]} : vector<8x128xf32> to vector<1x128xf32>
    %229 = vector.extract_strided_slice %227 {offsets = [0, 0], sizes = [1, 128], strides = [1, 1]} : vector<1x384xf32> to vector<1x128xf32>
    %230 = arith.addf %228, %229 : vector<1x128xf32>
    %231 = arith.negf %230 : vector<1x128xf32>
    %232 = math.exp %231 : vector<1x128xf32>
    %cst_68 = arith.constant 1.000000e+00 : f32
    %233 = vector.broadcast %cst_68 : f32 to vector<1x128xf32>
    %234 = arith.addf %233, %232 : vector<1x128xf32>
    %235 = arith.divf %233, %234 : vector<1x128xf32>
    %236 = vector.extract_strided_slice %11 {offsets = [6, 0], sizes = [1, 128], strides = [1, 1]} : vector<8x128xf32> to vector<1x128xf32>
    %237 = vector.extract_strided_slice %227 {offsets = [0, 128], sizes = [1, 128], strides = [1, 1]} : vector<1x384xf32> to vector<1x128xf32>
    %238 = arith.addf %236, %237 : vector<1x128xf32>
    %239 = arith.negf %238 : vector<1x128xf32>
    %240 = math.exp %239 : vector<1x128xf32>
    %cst_69 = arith.constant 1.000000e+00 : f32
    %241 = vector.broadcast %cst_69 : f32 to vector<1x128xf32>
    %242 = arith.addf %241, %240 : vector<1x128xf32>
    %243 = arith.divf %241, %242 : vector<1x128xf32>
    %244 = vector.extract_strided_slice %12 {offsets = [6, 0], sizes = [1, 128], strides = [1, 1]} : vector<8x128xf32> to vector<1x128xf32>
    %245 = vector.extract_strided_slice %227 {offsets = [0, 256], sizes = [1, 128], strides = [1, 1]} : vector<1x384xf32> to vector<1x128xf32>
    %246 = arith.addf %245, %13 : vector<1x128xf32>
    %247 = arith.mulf %235, %246 : vector<1x128xf32>
    %248 = arith.addf %244, %247 : vector<1x128xf32>
    %249 = math.tanh %248 : vector<1x128xf32>
    %cst_70 = arith.constant 1.000000e+00 : f32
    %250 = vector.broadcast %cst_70 : f32 to vector<1x128xf32>
    %251 = arith.subf %250, %243 : vector<1x128xf32>
    %252 = arith.mulf %251, %249 : vector<1x128xf32>
    %253 = arith.mulf %243, %223 : vector<1x128xf32>
    %254 = arith.addf %252, %253 : vector<1x128xf32>
    %c8_i32_71 = arith.constant 8 : i32
    %255 = arith.muli %arg0, %c8_i32_71 : i32
    %c6_i32 = arith.constant 6 : i32
    %256 = arith.addi %255, %c6_i32 : i32
    %c1_i32_72 = arith.constant 1 : i32
    %257 = arith.cmpi slt, %256, %c1_i32_72 : i32
    %258 = arith.select %257, %254, %223 : vector<1x128xf32>
    %c6 = arith.constant 6 : index
    %c0_73 = arith.constant 0 : index
    %259 = vector.load %arg12[%c6, %c0_73] : memref<8x128xf32, #tpu.memory_space<vmem>>, vector<1x128xf32>
    tpu.vector_store %arg12[%c6, %c0_73], %258 {strides = array<i32>} : memref<8x128xf32, #tpu.memory_space<vmem>>, vector<1x128xf32>,
    %260 = arith.truncf %258 : vector<1x128xf32> to vector<1x128xbf16>
    %c0_74 = arith.constant 0 : index
    %c0_75 = arith.constant 0 : index
    %261 = vector.load %arg4[%c0_74, %c0_75] : memref<128x384xbf16, #tpu.memory_space<vmem>>, vector<128x384xbf16>
    %cst_76 = arith.constant dense<0.000000e+00> : vector<1x384xf32>
    %262 = tpu.matmul %260, %261, %cst_76 {dimension_numbers = #tpu.dot_dimension_numbers<[1], [0], [0], [1], [0, 0, 1, 1], [], []>} : vector<1x128xbf16>, vector<128x384xbf16>, vector<1x384xf32> -> vector<1x384xf32>
    %263 = vector.extract_strided_slice %10 {offsets = [7, 0], sizes = [1, 128], strides = [1, 1]} : vector<8x128xf32> to vector<1x128xf32>
    %264 = vector.extract_strided_slice %262 {offsets = [0, 0], sizes = [1, 128], strides = [1, 1]} : vector<1x384xf32> to vector<1x128xf32>
    %265 = arith.addf %263, %264 : vector<1x128xf32>
    %266 = arith.negf %265 : vector<1x128xf32>
    %267 = math.exp %266 : vector<1x128xf32>
    %cst_77 = arith.constant 1.000000e+00 : f32
    %268 = vector.broadcast %cst_77 : f32 to vector<1x128xf32>
    %269 = arith.addf %268, %267 : vector<1x128xf32>
    %270 = arith.divf %268, %269 : vector<1x128xf32>
    %271 = vector.extract_strided_slice %11 {offsets = [7, 0], sizes = [1, 128], strides = [1, 1]} : vector<8x128xf32> to vector<1x128xf32>
    %272 = vector.extract_strided_slice %262 {offsets = [0, 128], sizes = [1, 128], strides = [1, 1]} : vector<1x384xf32> to vector<1x128xf32>
    %273 = arith.addf %271, %272 : vector<1x128xf32>
    %274 = arith.negf %273 : vector<1x128xf32>
    %275 = math.exp %274 : vector<1x128xf32>
    %cst_78 = arith.constant 1.000000e+00 : f32
    %276 = vector.broadcast %cst_78 : f32 to vector<1x128xf32>
    %277 = arith.addf %276, %275 : vector<1x128xf32>
    %278 = arith.divf %276, %277 : vector<1x128xf32>
    %279 = vector.extract_strided_slice %12 {offsets = [7, 0], sizes = [1, 128], strides = [1, 1]} : vector<8x128xf32> to vector<1x128xf32>
    %280 = vector.extract_strided_slice %262 {offsets = [0, 256], sizes = [1, 128], strides = [1, 1]} : vector<1x384xf32> to vector<1x128xf32>
    %281 = arith.addf %280, %13 : vector<1x128xf32>
    %282 = arith.mulf %270, %281 : vector<1x128xf32>
    %283 = arith.addf %279, %282 : vector<1x128xf32>
    %284 = math.tanh %283 : vector<1x128xf32>
    %cst_79 = arith.constant 1.000000e+00 : f32
    %285 = vector.broadcast %cst_79 : f32 to vector<1x128xf32>
    %286 = arith.subf %285, %278 : vector<1x128xf32>
    %287 = arith.mulf %286, %284 : vector<1x128xf32>
    %288 = arith.mulf %278, %258 : vector<1x128xf32>
    %289 = arith.addf %287, %288 : vector<1x128xf32>
    %c8_i32_80 = arith.constant 8 : i32
    %290 = arith.muli %arg0, %c8_i32_80 : i32
    %c7_i32 = arith.constant 7 : i32
    %291 = arith.addi %290, %c7_i32 : i32
    %c1_i32_81 = arith.constant 1 : i32
    %292 = arith.cmpi slt, %291, %c1_i32_81 : i32
    %293 = arith.select %292, %289, %258 : vector<1x128xf32>
    %c7 = arith.constant 7 : index
    %c0_82 = arith.constant 0 : index
    %294 = vector.load %arg12[%c7, %c0_82] : memref<8x128xf32, #tpu.memory_space<vmem>>, vector<1x128xf32>
    tpu.vector_store %arg12[%c7, %c0_82], %293 {strides = array<i32>} : memref<8x128xf32, #tpu.memory_space<vmem>>, vector<1x128xf32>,
    %c0_83 = arith.constant 0 : index
    %c0_84 = arith.constant 0 : index
    %295 = vector.load %arg11[%c0_83, %c0_84] : memref<1x128xf32, #tpu.memory_space<vmem>>, vector<1x128xf32>
    tpu.vector_store %arg11[%c0_83, %c0_84], %293 {strides = array<i32>} : memref<1x128xf32, #tpu.memory_space<vmem>>, vector<1x128xf32>,
    %c0_85 = arith.constant 0 : index
    %c0_86 = arith.constant 0 : index
    %296 = vector.load %arg10[%c0_85, %c0_86] : memref<1x128xf32, #tpu.memory_space<vmem>>, vector<1x128xf32>
    tpu.vector_store %arg10[%c0_85, %c0_86], %293 {strides = array<i32>} : memref<1x128xf32, #tpu.memory_space<vmem>>, vector<1x128xf32>,
    %c0_87 = arith.constant 0 : index
    %c0_88 = arith.constant 0 : index
    %297 = vector.load %arg12[%c0_87, %c0_88] : memref<8x128xf32, #tpu.memory_space<vmem>>, vector<8x128xf32>
    %298 = arith.truncf %297 : vector<8x128xf32> to vector<8x128xbf16>
    %c0_89 = arith.constant 0 : index
    %c0_90 = arith.constant 0 : index
    %299 = vector.load %arg7[%c0_89, %c0_90] : memref<128x256xbf16, #tpu.memory_space<vmem>>, vector<128x256xbf16>
    %cst_91 = arith.constant dense<0.000000e+00> : vector<8x256xf32>
    %300 = tpu.matmul %298, %299, %cst_91 {dimension_numbers = #tpu.dot_dimension_numbers<[1], [0], [0], [1], [0, 0, 1, 1], [], []>} : vector<8x128xbf16>, vector<128x256xbf16>, vector<8x256xf32> -> vector<8x256xf32>
    %c0_92 = arith.constant 0 : index
    %c0_93 = arith.constant 0 : index
    %301 = vector.load %arg8[%c0_92, %c0_93] : memref<1x256xf32, #tpu.memory_space<vmem>>, vector<1x256xf32>
    %302 = vector.broadcast %301 : vector<1x256xf32> to vector<8x256xf32>
    %303 = arith.addf %300, %302 : vector<8x256xf32>
    %cst_94 = arith.constant dense<0xFF800000> : vector<8xf32>
    %304 = vector.multi_reduction <maximumf>, %303, %cst_94 [1] : vector<8x256xf32> to vector<8xf32>
    %305 = vector.shape_cast %304 : vector<8xf32> to vector<8x1xf32>
    %306 = vector.broadcast %305 : vector<8x1xf32> to vector<8x256xf32>
    %307 = arith.subf %303, %306 : vector<8x256xf32>
    %308 = math.exp %307 : vector<8x256xf32>
    %cst_95 = arith.constant dense<0.000000e+00> : vector<8xf32>
    %309 = vector.multi_reduction <add>, %308, %cst_95 [1] : vector<8x256xf32> to vector<8xf32>
    %310 = vector.shape_cast %309 : vector<8xf32> to vector<8x1xf32>
    %311 = math.log %310 : vector<8x1xf32>
    %312 = arith.addf %311, %305 : vector<8x1xf32>
    %313 = vector.broadcast %312 : vector<8x1xf32> to vector<8x256xf32>
    %314 = arith.subf %303, %313 : vector<8x256xf32>
    %c0_96 = arith.constant 0 : index
    %c0_97 = arith.constant 0 : index
    %315 = vector.load %arg9[%c0_96, %c0_97] : memref<8x256xf32, #tpu.memory_space<vmem>>, vector<8x256xf32>
    tpu.vector_store %arg9[%c0_96, %c0_97], %314 {strides = array<i32>} : memref<8x256xf32, #tpu.memory_space<vmem>>, vector<8x256xf32>,
    return
  }
  func.func @transform_0(%arg0: i32) -> (i32, i32) {
    %c0_i32 = arith.constant 0 : i32
    %c0_i32_0 = arith.constant 0 : i32
    return %arg0, %c0_i32 : i32, i32
  }
  func.func @transform_1(%arg0: i32) -> (i32, i32) {
    %c0_i32 = arith.constant 0 : i32
    %c0_i32_0 = arith.constant 0 : i32
    %c0_i32_1 = arith.constant 0 : i32
    return %c0_i32, %c0_i32_0 : i32, i32
  }
  func.func @transform_2(%arg0: i32) -> (i32, i32) {
    %c0_i32 = arith.constant 0 : i32
    %c0_i32_0 = arith.constant 0 : i32
    %c0_i32_1 = arith.constant 0 : i32
    return %c0_i32, %c0_i32_0 : i32, i32
  }
  func.func @transform_3(%arg0: i32) -> (i32, i32) {
    %c0_i32 = arith.constant 0 : i32
    %c0_i32_0 = arith.constant 0 : i32
    %c0_i32_1 = arith.constant 0 : i32
    return %c0_i32, %c0_i32_0 : i32, i32
  }
  func.func @transform_4(%arg0: i32) -> (i32, i32) {
    %c0_i32 = arith.constant 0 : i32
    %c0_i32_0 = arith.constant 0 : i32
    %c0_i32_1 = arith.constant 0 : i32
    return %c0_i32, %c0_i32_0 : i32, i32
  }
  func.func @transform_5(%arg0: i32) -> (i32, i32) {
    %c0_i32 = arith.constant 0 : i32
    %c0_i32_0 = arith.constant 0 : i32
    %c0_i32_1 = arith.constant 0 : i32
    return %c0_i32, %c0_i32_0 : i32, i32
  }
  func.func @transform_6(%arg0: i32) -> (i32, i32) {
    %c0_i32 = arith.constant 0 : i32
    %c0_i32_0 = arith.constant 0 : i32
    %c0_i32_1 = arith.constant 0 : i32
    return %c0_i32, %c0_i32_0 : i32, i32
  }
  func.func @transform_7(%arg0: i32) -> (i32, i32) {
    %c0_i32 = arith.constant 0 : i32
    %c0_i32_0 = arith.constant 0 : i32
    %c0_i32_1 = arith.constant 0 : i32
    return %c0_i32, %c0_i32_0 : i32, i32
  }
  func.func @transform_8(%arg0: i32) -> (i32, i32) {
    %c0_i32 = arith.constant 0 : i32
    %c0_i32_0 = arith.constant 0 : i32
    return %arg0, %c0_i32 : i32, i32
  }
  func.func @transform_9(%arg0: i32) -> (i32, i32) {
    %c0_i32 = arith.constant 0 : i32
    %c0_i32_0 = arith.constant 0 : i32
    %c0_i32_1 = arith.constant 0 : i32
    return %c0_i32, %c0_i32_0 : i32, i32
  }
}

</mosaic_0001>

<bundles_post_ra>
// kernel: decoder_rnn_decode.1
= control target key start
LH: loop header
LB: loop body
LE: loop exit
PB: predicated region body
PF: predicated region fallthrough
CT: control target
= control target key end

     0   :  { %15 = vsyncpa [#allocation5], 0  ;;  %s3998_s0 = inlined_call_operand.vmem [shape: f32[8,128], index: 0, kind: input, shape index: {}]   ;;  %s3999_s1 = inlined_call_operand.vmem [shape: f32[1,128], index: 1, kind: input, shape index: {}]   ;;  %s4000_s2 = inlined_call_operand.hbm [shape: bf16[128,384], index: 2, kind: input, shape index: {}]   ;;  %s4001_s3 = inlined_call_operand.hbm [shape: bf16[128,384], index: 3, kind: input, shape index: {}]   ;;  %s4002_s4 = inlined_call_operand.vmem [shape: f32[1,384], index: 4, kind: input, shape index: {}]   ;;  %s4003_s5 = inlined_call_operand.vmem [shape: f32[1,128], index: 5, kind: input, shape index: {}]   ;;  %s4004_s6 = inlined_call_operand.hbm [shape: bf16[128,256], index: 6, kind: input, shape index: {}]   ;;  %s4005_s7 = inlined_call_operand.vmem [shape: f32[1,256], index: 7, kind: input, shape index: {}]   ;;  %s4006_s8 = inlined_call_operand.vmem [shape: f32[8,256], index: 8, kind: output, shape index: {0}]   ;;  %s4007_s9 = inlined_call_operand.vmem [shape: f32[1,128], index: 9, kind: output, shape index: {1}]  }
   0x1   :  { %16 = vsyncpa [#allocation7], 0  ;;  %s3565_s30 = smov [#allocation6]   ;;  %s3566_s11 = smov [#allocation4]  }
   0x2   :  { %s38_s10 = sshll.u32 %s3565_s30, 4  ;;  %s26_s12 = sshll.u32 %s3566_s11, 4  ;;  %s39_s10 = int_to_ptr.vmem [resolvable:$true] %s38_s10  ;;  %s27_s12 = int_to_ptr.vmem [resolvable:$true] %s26_s12 }
   0x3   :  { %s3509_s13 = scalar_lea.vmem %s39_s10, 3072  ;;  %p3514_p1 = scmp.lt.s32.totalorder %s39_s10, %s39_s10 }
   0x4   :  { %p3510_p0 = scmp.ne.s32.totalorder %s39_s10, %s3509_s13  ;;  %p3515_p2 = scmp.lt.s32.totalorder %s3509_s13, %s3509_s13 }
   0x6   :  { %p3516_p3 = por %p3515_p2, %p3514_p1 }
   0x8   :  { %p3517_p4 = pnand %p3516_p3, %p3510_p0 }
   0xa   :  { %3520 = shalt.err (!%p3517_p4)
}
   0xb   :  { %s3567_s14 = smov 192   ;;  %s3568_s15 = smov 12  }
   0xc   :  { %44 = dma.hbm_to_vmem [thread:$0]  %s4001_s3, 3072, %s39_s10, [#allocation7], %s3567_s14, %s3567_s14, %s3568_s15  }
   0xd   :  { %s3529_s18 = scalar_lea.vmem %s27_s12, 3072  ;;  %p3534_p6 = scmp.lt.s32.totalorder %s27_s12, %s27_s12 }
   0xe   :  { %p3530_p5 = scmp.ne.s32.totalorder %s27_s12, %s3529_s18  ;;  %p3535_p7 = scmp.lt.s32.totalorder %s3529_s18, %s3529_s18 }
  0x10   :  { %p3536_p8 = por %p3535_p7, %p3534_p6 }
  0x12   :  { %p3537_p9 = pnand %p3536_p8, %p3530_p5 }
  0x14   :  { %3540 = shalt.err (!%p3537_p9)
}
  0x15   :  { %32 = dma.hbm_to_vmem [thread:$0]  %s4000_s2, 3072, %s27_s12, [#allocation5], %s3567_s14, %s3567_s14, %s3568_s15  }
  0x16   :  { %s3569_s21 = smov [#allocation8]  }
  0x17   :  { %s54_s22 = sshll.u32 %s3569_s21, 4  ;;  %s55_s22 = int_to_ptr.vmem [resolvable:$true] %s54_s22 }
  0x18   :  { %s3549_s23 = scalar_lea.vmem %s55_s22, 2048  ;;  %p3554_p11 = scmp.lt.s32.totalorder %s55_s22, %s55_s22 }
  0x19   :  { %p3550_p10 = scmp.ne.s32.totalorder %s55_s22, %s3549_s23  ;;  %p3555_p12 = scmp.lt.s32.totalorder %s3549_s23, %s3549_s23 }
  0x1b   :  { %p3556_p13 = por %p3555_p12, %p3554_p11 }
  0x1d   :  { %p3557_p0 = pnand %p3556_p13, %p3550_p10 }
  0x1f   :  { %3560 = shalt.err (!%p3557_p0)
}
  0x20   :  { %s3570_s3 = smov 128   ;;  %s3571_s24 = smov 8  }
  0x21   :  { %60 = dma.hbm_to_vmem [thread:$0]  %s4004_s6, 2048, %s55_s22, [#allocation7], %s3570_s3, %s3570_s3, %s3571_s24  }
  0x22   :  { %3561 = dma.done.wait [#allocation5], 3072  }
  0x23   :  { %3562 = vsyncadd [#allocation5], 4294964224 }
  0x24   :  { %3563 = dma.done.wait [#allocation7], 5120  }
  0x25   :  { %3564 = vsyncadd [#allocation7], 4294962176  ;;  %v3572_v0 = vmov 0.0   ;;  %v3573_v1 = vmov 0   ;;  %vm3574_vm0 = vmmov 0   ;;  %v79_v23 = vld [vmem:[%s3998_s0] sm:$0xff] }
  0x26   :  { %3127 = vmatprep.subr.bf16.mxu1 %v3572_v0  ;;  %290 = vmatprep.mubr.bf16.mxu0 %v3573_v1  ;;  %v3317_v2 = vld [vmem:[#allocation4 + $0xac] ss:$12 sps:$4 sm:$0xff]   ;;  %v3319_v3 = vld [vmem:[#allocation4 + $0xa8] ss:$12 sps:$4 sm:$0xff]   ;;  %v3322_v5 = vld [vmem:[#allocation4 + $0x90] ss:$12 sps:$4 sm:$0xff]   ;;  %v80_v26 = vpack.c.bf16 %v79_v23, %v79_v23 }
  0x27   :  { %3143 = vmatprep.mubr.msk.bf16.mxu1 %vm3574_vm0, %v3572_v0  ;;  %258 = vmatprep.subr.bf16.mxu0 %v3317_v2  ;;  %v3320_v4 = vld [vmem:[#allocation4 + $0x94] ss:$12 sps:$4 sm:$0xff]   ;;  %v3323_v6 = vld [vmem:[#allocation4 + $0x7c] ss:$12 sps:$4 sm:$0xff]   ;;  %v3325_v7 = vld [vmem:[#allocation4 + $0x78] ss:$12 sps:$4 sm:$0xff]  }
  0x28   :  { %259 = vmatpush1.bf16.msra.mxu0 %v3319_v3  ;;  %v3326_v8 = vld [vmem:[#allocation4 + $0x64] ss:$12 sps:$4 sm:$0xff]   ;;  %v3328_v10 = vld [vmem:[#allocation4 + $0x60] ss:$12 sps:$4 sm:$0xff]   ;;  %v3331_v13 = vld [vmem:[#allocation4 + $0x48] ss:$12 sps:$4 sm:$0xff]  }
  0x29   :  { %260 = vmatprep.subr.bf16.mxu0 %v3320_v4  ;;  %v3338_v9 = vld [vmem:[#allocation4 + $0xb0] ss:$12 sps:$4 sm:$0xff]   ;;  %v3329_v11 = vld [vmem:[#allocation4 + $0x4c] ss:$12 sps:$4 sm:$0xff]   ;;  %v3332_v14 = vld [vmem:[#allocation4 + $0x34] ss:$12 sps:$4 sm:$0xff]  }
  0x2a   :  { %3128 = vmatpush3.bf16.msra.mxu1 %v3338_v9  ;;  %v3342_v12 = vld [vmem:[#allocation4 + $0x98] ss:$12 sps:$4 sm:$0xff]   ;;  %v3346_v15 = vld [vmem:[#allocation4 + $0x80] ss:$12 sps:$4 sm:$0xff]   ;;  %v3334_v16 = vld [vmem:[#allocation4 + $0x30] ss:$12 sps:$4 sm:$0xff]  }
  0x2b   :  { %3129 = vmatprep.subr.bf16.mxu1 %v3572_v0  ;;  %v3335_v17 = vld [vmem:[#allocation4 + $0x1c] ss:$12 sps:$4 sm:$0xff]   ;;  %v3337_v19 = vld [vmem:[#allocation4 + $0x18] ss:$12 sps:$4 sm:$0xff]   ;;  %v3341_v22 = vld [vmem:[#allocation4] ss:$12 sps:$4 sm:$0xff]  }
  0x2c   :  { %261 = vmatpush1.bf16.msra.mxu0 %v3322_v5  ;;  %v3350_v18 = vld [vmem:[#allocation4 + $0x68] ss:$12 sps:$4 sm:$0xff]   ;;  %v3339_v20 = vld [vmem:[#allocation4 + $0x4] ss:$12 sps:$4 sm:$0xff]   ;;  %v3645_v24 = vld [vmem:[#allocation6 + $0xac] ss:$12 sps:$4 sm:$0xff]  }
  0x2d   :  { %262 = vmatprep.subr.bf16.mxu0 %v3323_v6  ;;  %v3354_v21 = vld [vmem:[#allocation4 + $0x50] ss:$12 sps:$4 sm:$0xff]   ;;  %v3358_v25 = vld [vmem:[#allocation4 + $0x38] ss:$12 sps:$4 sm:$0xff]   ;;  %v3648_v27 = vld [vmem:[#allocation6 + $0xa8] ss:$12 sps:$4 sm:$0xff]  }
  0x2e   :  { %3130 = vmatpush3.bf16.msra.mxu1 %v3342_v12  ;;  %v3650_v28 = vld [vmem:[#allocation6 + $0x94] ss:$12 sps:$4 sm:$0xff]   ;;  %v3657_v31 = vld [vmem:[#allocation6 + $0x90] ss:$12 sps:$4 sm:$0xff]   ;;  %v3664_v34 = vld [vmem:[#allocation6 + $0x78] ss:$12 sps:$4 sm:$0xff]  }
  0x2f   :  { %3131 = vmatprep.subr.bf16.mxu1 %v3572_v0  ;;  %v77_v29 = vld [vmem:[%s3999_s1] sm:$0x1]  ;;  %v3362_v30 = vld [vmem:[#allocation4 + $0x20] ss:$12 sps:$4 sm:$0xff]   ;;  %v3660_v32 = vld [vmem:[#allocation6 + $0x7c] ss:$12 sps:$4 sm:$0xff]  }
  0x30   :  { %263 = vmatpush1.bf16.msra.mxu0 %v3325_v7  ;;  %78 = vst [vmem:[#allocation2] sm:$0x1] %v77_v29  ;;  %v3366_v33 = vld [vmem:[#allocation4 + $0x8] ss:$12 sps:$4 sm:$0xff]   ;;  %v3667_v35 = vld [vmem:[#allocation6 + $0x64] ss:$12 sps:$4 sm:$0xff]  }
  0x31   :  { %264 = vmatprep.subr.bf16.mxu0 %v3326_v8  ;;  %v3370_v36 = vld [vmem:[#allocation6 + $0xb0] ss:$12 sps:$4 sm:$0xff]   ;;  %v3671_v37 = vld [vmem:[#allocation6 + $0x60] ss:$12 sps:$4 sm:$0xff]   ;;  %v3374_v39 = vld [vmem:[#allocation6 + $0x98] ss:$12 sps:$4 sm:$0xff]   ;;  %v115_v8 = vlaneseq }
  0x32   :  { %3132 = vmatpush3.bf16.msra.mxu1 %v3346_v15  ;;  %v3674_v38 = vld [vmem:[#allocation6 + $0x4c] ss:$12 sps:$4 sm:$0xff]   ;;  %v3678_v40 = vld [vmem:[#allocation6 + $0x48] ss:$12 sps:$4 sm:$0xff]   ;;  %v3687_v43 = vld [vmem:[#allocation6 + $0x30] ss:$12 sps:$4 sm:$0xff]  }
  0x33   :  { %3133 = vmatprep.subr.bf16.mxu1 %v3572_v0  ;;  %v3683_v41 = vld [vmem:[#allocation6 + $0x34] ss:$12 sps:$4 sm:$0xff]   ;;  %v3690_v44 = vld [vmem:[#allocation6 + $0x1c] ss:$12 sps:$4 sm:$0xff]   ;;  %v3694_v46 = vld [vmem:[#allocation6 + $0x18] ss:$12 sps:$4 sm:$0xff]  }
  0x34   :  { %265 = vmatpush1.bf16.msra.mxu0 %v3328_v10  ;;  %v3375_v42 = vld [vmem:[#allocation6 + $0x80] ss:$12 sps:$4 sm:$0xff]   ;;  %v3376_v45 = vld [vmem:[#allocation6 + $0x68] ss:$12 sps:$4 sm:$0xff]   ;;  %v3697_v47 = vld [vmem:[#allocation6 + $0x4] ss:$12 sps:$4 sm:$0xff]  }
  0x35   :  { %266 = vmatprep.subr.bf16.mxu0 %v3329_v11  ;;  %v3377_v48 = vld [vmem:[#allocation6 + $0x50] ss:$12 sps:$4 sm:$0xff]   ;;  %v3701_v49 = vld [vmem:[#allocation6] ss:$12 sps:$4 sm:$0xff]   ;;  %v3378_v51 = vld [vmem:[#allocation6 + $0x38] ss:$12 sps:$4 sm:$0xff]  }
  0x36   :  { %3134 = vmatpush3.bf16.msra.mxu1 %v3350_v18  ;;  %v3379_v53 = vld [vmem:[#allocation6 + $0x20] ss:$12 sps:$4 sm:$0xff]   ;;  %v3380_v54 = vld [vmem:[#allocation6 + $0x8] ss:$12 sps:$4 sm:$0xff]   ;;  %v3381_v55 = vld [vmem:[#allocation6 + $0xb0] ss:$12 sps:$4 sm:$0xff]  }
  0x37   :  { %3135 = vmatprep.subr.bf16.mxu1 %v3572_v0  ;;  %v3703_v50 = vld [vmem:[#allocation2] sm:$0x1]  ;;  %v3382_v56 = vld [vmem:[#allocation6 + $0x98] ss:$12 sps:$4 sm:$0xff]   ;;  %v3383_v57 = vld [vmem:[#allocation6 + $0x80] ss:$12 sps:$4 sm:$0xff]  }
  0x38   :  { %267 = vmatpush1.bf16.msra.mxu0 %v3331_v13  ;;  %v341_v52 = vpack.c.bf16 %v3703_v50, %v3703_v50  ;;  %v3384_v58 = vld [vmem:[#allocation6 + $0x68] ss:$12 sps:$4 sm:$0xff]   ;;  %v3385_v59 = vld [vmem:[#allocation6 + $0x50] ss:$12 sps:$4 sm:$0xff]   ;;  %v3386_v60 = vld [vmem:[#allocation6 + $0x38] ss:$12 sps:$4 sm:$0xff]  }
  0x39   :  { %268 = vmatprep.subr.bf16.mxu0 %v3332_v14  ;;  %v3387_v61 = vld [vmem:[#allocation6 + $0x20] ss:$12 sps:$4 sm:$0xff]   ;;  %v3388_v62 = vld [vmem:[#allocation6 + $0x8] ss:$12 sps:$4 sm:$0xff]   ;;  %v3743_v10 = vshrl.u32 %v115_v8, 7 }
  0x3a   :  { %3136 = vmatpush3.bf16.msra.mxu1 %v3354_v21  ;;  %v113_v12 = vld [vmem:[%s4002_s4] sm:$0x7] }
  0x3b   :  { %3137 = vmatprep.subr.bf16.mxu1 %v3572_v0  ;;  %v117_v11 = vsub.s32 0, %v3743_v10  ;;  %v121_v14 = vsub.s32 1, %v3743_v10 }
  0x3c   :  { %269 = vmatpush1.bf16.msra.mxu0 %v3334_v16 }
  0x3d   :  { %270 = vmatprep.subr.bf16.mxu0 %v3335_v17  ;;  %v118_v13 = vrot.slane %v113_v12, %v117_v11  ;;  %v122_v17 = vrot.slane %v113_v12, %v121_v14 }
  0x3e   :  { %3138 = vmatpush3.bf16.msra.mxu1 %v3358_v25 }
  0x3f   :  { %3139 = vmatprep.subr.bf16.mxu1 %v3572_v0 }
  0x40   :  { %271 = vmatpush1.bf16.msra.mxu0 %v3337_v19 }
  0x41   :  { %272 = vmatprep.subr.bf16.mxu0 %v3339_v20 }
  0x42   :  { %3140 = vmatpush3.bf16.msra.mxu1 %v3362_v30 }
  0x43   :  { %3141 = vmatprep.subr.bf16.mxu1 %v3572_v0 }
  0x44   :  { %273 = vmatpush1.bf16.msra.mxu0 %v3341_v22 }
  0x45   :  { %502 = vmatprep.subr.bf16.mxu0 %v3645_v24 }
  0x46   :  { %3142 = vmatpush3.bf16.msra.mxu1 %v3366_v33 }
  0x47   :  { %291 = vmatmul.mubr.bf16.vlgmr.msra.gmra.mxu0 %v80_v26  ;;  %3147 = vmatprep.subr.bf16.mxu1 %v3572_v0 }
  0x48   :  { %503 = vmatpush1.bf16.msra.mxu0 %v3648_v27  ;;  %534 = vmatprep.mubr.bf16.mxu0 %v3573_v1 }
  0x49   :  { %504 = vmatprep.subr.bf16.mxu0 %v3650_v28  ;;  %3144 = vmatmul.mubr.bf16.vlgmr.msra.gmra.mxu1 %v80_v26 }
  0x4a   :  { %3148 = vmatpush3.bf16.msra.mxu1 %v3370_v36  ;;  %3163 = vmatprep.mubr.msk.bf16.mxu1 %vm3574_vm0, %v3572_v0 }
  0x4b   :  { %3149 = vmatprep.subr.bf16.mxu1 %v3572_v0 }
  0x4c   :  { %505 = vmatpush1.bf16.msra.mxu0 %v3657_v31 }
  0x4d   :  { %506 = vmatprep.subr.bf16.mxu0 %v3660_v32 }
  0x4e   :  { %3150 = vmatpush3.bf16.msra.mxu1 %v3374_v39 }
  0x4f   :  { %3151 = vmatprep.subr.bf16.mxu1 %v3572_v0 }
  0x50   :  { %507 = vmatpush1.bf16.msra.mxu0 %v3664_v34 }
  0x51   :  { %508 = vmatprep.subr.bf16.mxu0 %v3667_v35 }
  0x52   :  { %3152 = vmatpush3.bf16.msra.mxu1 %v3375_v42 }
  0x53   :  { %3153 = vmatprep.subr.bf16.mxu1 %v3572_v0 }
  0x54   :  { %509 = vmatpush1.bf16.msra.mxu0 %v3671_v37 }
  0x55   :  { %510 = vmatprep.subr.bf16.mxu0 %v3674_v38 }
  0x56   :  { %3154 = vmatpush3.bf16.msra.mxu1 %v3376_v45  ;;  %v125_v45 = vsub.s32 2, %v3743_v10 }
  0x57   :  { %3155 = vmatprep.subr.bf16.mxu1 %v3572_v0 }
  0x58   :  { %511 = vmatpush1.bf16.msra.mxu0 %v3678_v40 }
  0x59   :  { %512 = vmatprep.subr.bf16.mxu0 %v3683_v41 }
  0x5a   :  { %3156 = vmatpush3.bf16.msra.mxu1 %v3377_v48 }
  0x5b   :  { %3157 = vmatprep.subr.bf16.mxu1 %v3572_v0 }
  0x5c   :  { %513 = vmatpush1.bf16.msra.mxu0 %v3687_v43 }
  0x5d   :  { %514 = vmatprep.subr.bf16.mxu0 %v3690_v44 }
  0x5e   :  { %3158 = vmatpush3.bf16.msra.mxu1 %v3378_v51  ;;  %v339_v51 = vld [vmem:[%s4003_s5] sm:$0x1] }
  0x5f   :  { %3159 = vmatprep.subr.bf16.mxu1 %v3572_v0 }
  0x60   :  { %515 = vmatpush1.bf16.msra.mxu0 %v3694_v46 }
  0x61   :  { %516 = vmatprep.subr.bf16.mxu0 %v3697_v47 }
  0x62   :  { %3160 = vmatpush3.bf16.msra.mxu1 %v3379_v53 }
  0x63   :  { %3161 = vmatprep.subr.bf16.mxu1 %v3572_v0 }
  0x64   :  { %517 = vmatpush1.bf16.msra.mxu0 %v3701_v49 }
  0x65   :  { %773 = vmatprep.subr.bf16.mxu0 %v3645_v24 }
  0x66   :  { %3162 = vmatpush3.bf16.msra.mxu1 %v3380_v54 }
  0x67   :  { %535 = vmatmul.mubr.bf16.vlgmr.msra.gmra.mxu0 %v341_v52  ;;  %3167 = vmatprep.subr.bf16.mxu1 %v3572_v0 }
  0x68   :  { %774 = vmatpush1.bf16.msra.mxu0 %v3648_v27  ;;  %805 = vmatprep.mubr.bf16.mxu0 %v3573_v1 }
  0x69   :  { %775 = vmatprep.subr.bf16.mxu0 %v3650_v28  ;;  %3164 = vmatmul.mubr.bf16.vlgmr.msra.gmra.mxu1 %v341_v52  ;;  %v126_v52 = vrot.slane %v113_v12, %v125_v45  ;;  %v3405_v45 = vld [vmem:[#allocation6 + $0xb0] ss:$12 sps:$4 sm:$0xff]  }
  0x6a   :  { %3183 = vmatprep.mubr.msk.bf16.mxu1 %vm3574_vm0, %v3572_v0  ;;  %3168 = vmatpush3.bf16.msra.mxu1 %v3381_v55 }
  0x6b   :  { %3169 = vmatprep.subr.bf16.mxu1 %v3572_v0 }
  0x6c   :  { %776 = vmatpush1.bf16.msra.mxu0 %v3657_v31 }
  0x6d   :  { %777 = vmatprep.subr.bf16.mxu0 %v3660_v32 }
  0x6e   :  { %3170 = vmatpush3.bf16.msra.mxu1 %v3382_v56 }
  0x6f   :  { %3171 = vmatprep.subr.bf16.mxu1 %v3572_v0 }
  0x70   :  { %778 = vmatpush1.bf16.msra.mxu0 %v3664_v34 }
  0x71   :  { %779 = vmatprep.subr.bf16.mxu0 %v3667_v35 }
  0x72   :  { %3172 = vmatpush3.bf16.msra.mxu1 %v3383_v57 }
  0x73   :  { %3173 = vmatprep.subr.bf16.mxu1 %v3572_v0 }
  0x74   :  { %780 = vmatpush1.bf16.msra.mxu0 %v3671_v37 }
  0x75   :  { %781 = vmatprep.subr.bf16.mxu0 %v3674_v38 }
  0x76   :  { %3174 = vmatpush3.bf16.msra.mxu1 %v3384_v58 }
  0x77   :  { %3175 = vmatprep.subr.bf16.mxu1 %v3572_v0 }
  0x78   :  { %782 = vmatpush1.bf16.msra.mxu0 %v3678_v40 }
  0x79   :  { %783 = vmatprep.subr.bf16.mxu0 %v3683_v41 }
  0x7a   :  { %3176 = vmatpush3.bf16.msra.mxu1 %v3385_v59 }
  0x7b   :  { %3177 = vmatprep.subr.bf16.mxu1 %v3572_v0 }
  0x7c   :  { %784 = vmatpush1.bf16.msra.mxu0 %v3687_v43 }
  0x7d   :  { %785 = vmatprep.subr.bf16.mxu0 %v3690_v44 }
  0x7e   :  { %3178 = vmatpush3.bf16.msra.mxu1 %v3386_v60 }
  0x7f   :  { %3179 = vmatprep.subr.bf16.mxu1 %v3572_v0 }
  0x80   :  { %786 = vmatpush1.bf16.msra.mxu0 %v3694_v46 }
  0x81   :  { %787 = vmatprep.subr.bf16.mxu0 %v3697_v47 }
  0x82   :  { %3180 = vmatpush3.bf16.msra.mxu1 %v3387_v61 }
  0x83   :  { %3181 = vmatprep.subr.bf16.mxu1 %v3572_v0 }
  0x84   :  { %788 = vmatpush1.bf16.msra.mxu0 %v3701_v49 }
  0x85   :  { %1060 = vmatprep.subr.bf16.mxu0 %v3645_v24 }
  0x86   :  { %3182 = vmatpush3.bf16.msra.mxu1 %v3388_v62 }
  0x87   :  { %3187 = vmatprep.subr.bf16.mxu1 %v3572_v0 }
 0x107   :  { %v292_v63 = vpop.f32.mrf.mxu0 }
 0x108   :  { %v293_v15 = vadd.f32 %v292_v63, %v118_v13 }
 0x109   :  { %v294_v2 = vpop.f32.mrf.mxu0  ;;  %v333_v5 = vpop.f32.mrf.mxu1 }
 0x10a   :  { %v295_v22 = vadd.f32 %v294_v2, %v122_v17  ;;  %v334_v56 = vadd.f32 %v333_v5, %v126_v52  ;;  %v3390_v5 = vld [vmem:[#allocation6 + $0x98] ss:$12 sps:$4 sm:$0xff]   ;;  %v3393_v17 = vld [vmem:[#allocation6 + $0x50] ss:$12 sps:$4 sm:$0xff]  }
 0x10b   :  { %v296_v3 = vpop.f32.mrf.mxu0  ;;  %v3145_v6 = vpop.f32.mrf.mxu1  ;;  %v3884_v52 = vld [vmem:[#allocation6 + $0x78] ss:$12 sps:$4 sm:$0xff]  }
 0x10c   :  { %v3389_v3 = vld [vmem:[#allocation6 + $0xb0] ss:$12 sps:$4 sm:$0xff]  }
 0x10d   :  { %v297_v4 = vpop.f32.mrf.mxu0  ;;  %v336_v7 = vpop.f32.mrf.mxu1 }
 0x10f   :  { %v3146_v9 = vpop.f32.mrf.mxu1 }
 0x110   :  { %v3391_v9 = vld [vmem:[#allocation6 + $0x80] ss:$12 sps:$4 sm:$0xff]  }
 0x127   :  { %v536_v16 = vpop.f32.mrf.mxu0 }
 0x128   :  { %v583_v18 = vadd.f32 %v536_v16, %v293_v15  ;;  %v3392_v15 = vld [vmem:[#allocation6 + $0x68] ss:$12 sps:$4 sm:$0xff]  }
 0x129   :  { %v538_v19 = vpop.f32.mrf.mxu0  ;;  %v577_v26 = vpop.f32.mrf.mxu1 }
 0x12a   :  { %v2846_v20 = vmul.f32 -1.442695, %v583_v18  ;;  %v590_v25 = vadd.f32 %v538_v19, %v295_v22  ;;  %v597_v54 = vadd.f32 %v577_v26, %v339_v51  ;;  %v3394_v18 = vld [vmem:[#allocation6 + $0x38] ss:$12 sps:$4 sm:$0xff]   ;;  %v3395_v19 = vld [vmem:[#allocation6 + $0x20] ss:$12 sps:$4 sm:$0xff]  }
 0x12b   :  { %v540_v21 = vpop.f32.mrf.mxu0  ;;  %v3165_v30 = vpop.f32.mrf.mxu1  ;;  %v3397_v22 = vld [vmem:[#allocation6 + $0xb0] ss:$12 sps:$4 sm:$0xff]   ;;  %v3399_v26 = vld [vmem:[#allocation6 + $0x80] ss:$12 sps:$4 sm:$0xff]   ;;  %v3406_v51 = vld [vmem:[#allocation6 + $0x98] ss:$12 sps:$4 sm:$0xff]  }
 0x12c   :  { %3485 = vpow2.f32 %v2846_v20  ;;  %v2847_v29 = vmul.f32 -1.442695, %v590_v25  ;;  %v3396_v20 = vld [vmem:[#allocation6 + $0x8] ss:$12 sps:$4 sm:$0xff]   ;;  %v3398_v25 = vld [vmem:[#allocation6 + $0x98] ss:$12 sps:$4 sm:$0xff]  }
 0x12d   :  { %v541_v23 = vpop.f32.mrf.mxu0  ;;  %v580_v33 = vpop.f32.mrf.mxu1  ;;  %v3401_v30 = vld [vmem:[#allocation6 + $0x50] ss:$12 sps:$4 sm:$0xff]  }
 0x12e   :  { %3487 = vpow2.f32 %v2847_v29  ;;  %v3400_v29 = vld [vmem:[#allocation6 + $0x68] ss:$12 sps:$4 sm:$0xff]   ;;  %v3402_v33 = vld [vmem:[#allocation6 + $0x38] ss:$12 sps:$4 sm:$0xff]  }
 0x12f   :  { %v3166_v36 = vpop.f32.mrf.mxu1 }
 0x130   :  { %v3403_v36 = vld [vmem:[#allocation6 + $0x20] ss:$12 sps:$4 sm:$0xff]  }
 0x139   :  { %v3486_v39 = vpop.eup %3485 }
 0x13a   :  { %v587_v42 = vadd.f32 1.0, %v3486_v39  ;;  %v3404_v39 = vld [vmem:[#allocation6 + $0x8] ss:$12 sps:$4 sm:$0xff]  }
 0x13b   :  { %v3488_v48 = vpop.eup %3487 }
 0x13c   :  { %3489 = vrcp.f32 %v587_v42  ;;  %v594_v53 = vadd.f32 1.0, %v3488_v48 }
 0x13e   :  { %3491 = vrcp.f32 %v594_v53  ;;  %v3424_v53 = vld [vmem:[#allocation6 + $0x80] ss:$12 sps:$4 sm:$0xff]  }
 0x149   :  { %v3490_v55 = vpop.eup %3489 }
 0x14a   :  { %v598_v57 = vmul.f32 %v3490_v55, %v597_v54  ;;  %v3888_v54 = vld [vmem:[#allocation6 + $0x64] ss:$12 sps:$4 sm:$0xff]   ;;  %v3891_v55 = vld [vmem:[#allocation6 + $0x60] ss:$12 sps:$4 sm:$0xff]  }
 0x14b   :  { %v3492_v59 = vpop.eup %3491 }
 0x14c   :  { %v599_v58 = vadd.f32 %v598_v57, %v334_v56  ;;  %v601_v60 = vsub.f32 1.0, %v3492_v59  ;;  %v603_v63 = vmul.f32 %v3492_v59, %v3703_v50  ;;  %v3428_v56 = vld [vmem:[#allocation6 + $0x68] ss:$12 sps:$4 sm:$0xff]   ;;  %v3895_v57 = vld [vmem:[#allocation6 + $0x4c] ss:$12 sps:$4 sm:$0xff]  }
 0x14d   :  { %v3432_v59 = vld [vmem:[#allocation6 + $0x50] ss:$12 sps:$4 sm:$0xff]  }
 0x14e   :  { %3493 = vtanh.f32 %v599_v58  ;;  %v3898_v58 = vld [vmem:[#allocation6 + $0x48] ss:$12 sps:$4 sm:$0xff]  }
 0x15b   :  { %v3494_v61 = vpop.eup %3493 }
 0x15c   :  { %v602_v62 = vmul.f32 %v3494_v61, %v601_v60  ;;  %v3902_v60 = vld [vmem:[#allocation6 + $0x34] ss:$12 sps:$4 sm:$0xff]   ;;  %v3905_v61 = vld [vmem:[#allocation6 + $0x30] ss:$12 sps:$4 sm:$0xff]  }
 0x15e   :  { %v604_v2 = vadd.f32 %v603_v63, %v602_v62  ;;  %v3436_v62 = vld [vmem:[#allocation6 + $0x38] ss:$12 sps:$4 sm:$0xff]   ;;  %v3909_v63 = vld [vmem:[#allocation6 + $0x1c] ss:$12 sps:$4 sm:$0xff]  }
 0x160   :  { %611 = vst [vmem:[#allocation3] sm:$0x1] %v604_v2  ;;  %v612_v4 = vpack.c.bf16 %v604_v2, %v604_v2  ;;  %v884_v6 = vrot.slane %v604_v2, 7  ;;  %v3912_v2 = vld [vmem:[#allocation6 + $0x18] ss:$12 sps:$4 sm:$0xff]  }
 0x162   :  { %806 = vmatmul.mubr.bf16.vlgmr.msra.gmra.mxu0 %v612_v4  ;;  %3184 = vmatmul.mubr.bf16.vlgmr.msra.gmra.mxu1 %v612_v4  ;;  %894 = vst [vmem:[#allocation3] sm:$0x2] %v884_v6  ;;  %v3759_v7 = vrot.slane %v884_v6, 7  ;;  %v895_v21 = vpack.c.bf16 %v884_v6, %v884_v6  ;;  %v3916_v4 = vld [vmem:[#allocation6 + $0x4] ss:$12 sps:$4 sm:$0xff]  }
 0x163   :  { %1061 = vmatpush1.bf16.msra.mxu0 %v3648_v27  ;;  %3188 = vmatpush3.bf16.msra.mxu1 %v3389_v3  ;;  %v3440_v3 = vld [vmem:[#allocation6 + $0x20] ss:$12 sps:$4 sm:$0xff]  }
 0x164   :  { %1062 = vmatprep.subr.bf16.mxu0 %v3650_v28  ;;  %3189 = vmatprep.subr.bf16.mxu1 %v3572_v0  ;;  %1181 = vst [vmem:[#allocation3] sm:$0x4] %v3759_v7  ;;  %v3766_v50 = vrot.slane %v3759_v7, 7  ;;  %v929_v23 = vshrl.u32 %v895_v21, 16  ;;  %v1182_v42 = vpack.c.bf16 %v3759_v7, %v3759_v7  ;;  %v3919_v6 = vld [vmem:[#allocation6] ss:$12 sps:$4 sm:$0xff]  }
 0x165   :  { %1092 = vmatprep.mubr.bf16.mxu0 %v3573_v1  ;;  %3203 = vmatprep.mubr.msk.bf16.mxu1 %vm3574_vm0, %v3572_v0  ;;  %v3444_v7 = vld [vmem:[#allocation6 + $0x8] ss:$12 sps:$4 sm:$0xff]  }
 0x166   :  { %1467 = vst [vmem:[#allocation3] sm:$0x8] %v3766_v50  ;;  %v3773_v8 = vrot.slane %v3766_v50, 7  ;;  %v1216_v48 = vrot.slane %v1182_v42, 1  ;;  %v3452_v21 = vld [vmem:[#allocation6 + $0x8] ss:$12 sps:$4 sm:$0xff]  }
 0x167   :  { %1063 = vmatpush1.bf16.msra.mxu0 %v3657_v31  ;;  %3190 = vmatpush3.bf16.msra.mxu1 %v3390_v5 }
 0x168   :  { %1064 = vmatprep.subr.bf16.mxu0 %v3660_v32  ;;  %3191 = vmatprep.subr.bf16.mxu1 %v3572_v0  ;;  %1755 = vst [vmem:[#allocation3] sm:$0x10] %v3773_v8  ;;  %v3780_v12 = vrot.slane %v3773_v8, 7  ;;  %v1756_v5 = vpack.c.bf16 %v3773_v8, %v3773_v8  ;;  %v3447_v8 = vld [vmem:[#allocation6 + $0x80] ss:$12 sps:$4 sm:$0xff]  }
 0x16a   :  { %2041 = vst [vmem:[#allocation3] sm:$0x20] %v3780_v12  ;;  %v3784_v13 = vrot.slane %v3780_v12, 7 }
 0x16b   :  { %1065 = vmatpush1.bf16.msra.mxu0 %v3664_v34  ;;  %3192 = vmatpush3.bf16.msra.mxu1 %v3391_v9  ;;  %v1790_v9 = vrot.slane %v1756_v5, 2 }
 0x16c   :  { %1066 = vmatprep.subr.bf16.mxu0 %v3667_v35  ;;  %3193 = vmatprep.subr.bf16.mxu1 %v3572_v0  ;;  %2329 = vst [vmem:[#allocation3] sm:$0x40] %v3784_v13  ;;  %v2605_v16 = vrot.slane %v3784_v13, 7  ;;  %v2330_v42 = vpack.c.bf16 %v3784_v13, %v3784_v13  ;;  %v3469_v13 = vld [vmem:[#allocation8 + $0x54] ss:$8 sps:$4 sm:$0xff]  }
 0x16e   :  { %2615 = vst [vmem:[#allocation3] sm:$0x80] %v2605_v16  ;;  %2616 = vst [vmem:[#allocation2 - $0x7] sm:$0x80] %v2605_v16 }
 0x16f   :  { %2617 = vst [vmem:[%s4007_s9 - $0x7] sm:$0x80] %v2605_v16  ;;  %1067 = vmatpush1.bf16.msra.mxu0 %v3671_v37  ;;  %3194 = vmatpush3.bf16.msra.mxu1 %v3392_v15  ;;  %v3446_v15 = vld [vmem:[#allocation6 + $0x98] ss:$12 sps:$4 sm:$0xff]   ;;  %v3448_v16 = vld [vmem:[#allocation6 + $0x68] ss:$12 sps:$4 sm:$0xff]  }
 0x170   :  { %1068 = vmatprep.subr.bf16.mxu0 %v3674_v38  ;;  %3195 = vmatprep.subr.bf16.mxu1 %v3572_v0 }
 0x173   :  { %1069 = vmatpush1.bf16.msra.mxu0 %v3678_v40  ;;  %3196 = vmatpush3.bf16.msra.mxu1 %v3393_v17  ;;  %v3449_v17 = vld [vmem:[#allocation6 + $0x50] ss:$12 sps:$4 sm:$0xff]  }
 0x174   :  { %1070 = vmatprep.subr.bf16.mxu0 %v3683_v41  ;;  %3197 = vmatprep.subr.bf16.mxu1 %v3572_v0 }
 0x177   :  { %1071 = vmatpush1.bf16.msra.mxu0 %v3687_v43  ;;  %3198 = vmatpush3.bf16.msra.mxu1 %v3394_v18  ;;  %v3450_v18 = vld [vmem:[#allocation6 + $0x38] ss:$12 sps:$4 sm:$0xff]  }
 0x178   :  { %1072 = vmatprep.subr.bf16.mxu0 %v3690_v44  ;;  %3199 = vmatprep.subr.bf16.mxu1 %v3572_v0 }
 0x17b   :  { %1073 = vmatpush1.bf16.msra.mxu0 %v3694_v46  ;;  %3200 = vmatpush3.bf16.msra.mxu1 %v3395_v19  ;;  %v3451_v19 = vld [vmem:[#allocation6 + $0x20] ss:$12 sps:$4 sm:$0xff]  }
 0x17c   :  { %1074 = vmatprep.subr.bf16.mxu0 %v3697_v47  ;;  %3201 = vmatprep.subr.bf16.mxu1 %v3572_v0 }
 0x17f   :  { %1075 = vmatpush1.bf16.msra.mxu0 %v3701_v49  ;;  %3202 = vmatpush3.bf16.msra.mxu1 %v3396_v20  ;;  %v2042_v20 = vpack.c.bf16 %v3780_v12, %v3780_v12  ;;  %v3454_v12 = vld [vmem:[#allocation6 + $0x98] ss:$12 sps:$4 sm:$0xff]  }
 0x180   :  { %1346 = vmatprep.subr.bf16.mxu0 %v3645_v24  ;;  %3207 = vmatprep.subr.bf16.mxu1 %v3572_v0 }
 0x182   :  { %1093 = vmatmul.mubr.bf16.vlgmr.msra.gmra.mxu0 %v929_v23  ;;  %3204 = vmatmul.mubr.bf16.vlgmr.msra.gmra.mxu1 %v929_v23  ;;  %v3453_v23 = vld [vmem:[#allocation6 + $0xb0] ss:$12 sps:$4 sm:$0xff]  }
 0x183   :  { %1347 = vmatpush1.bf16.msra.mxu0 %v3648_v27  ;;  %3208 = vmatpush3.bf16.msra.mxu1 %v3397_v22  ;;  %v2076_v22 = vshrl.u32 %v2042_v20, 16 }
 0x184   :  { %1348 = vmatprep.subr.bf16.mxu0 %v3650_v28  ;;  %3209 = vmatprep.subr.bf16.mxu1 %v3572_v0 }
 0x185   :  { %1378 = vmatprep.mubr.bf16.mxu0 %v3573_v1  ;;  %3223 = vmatprep.mubr.msk.bf16.mxu1 %vm3574_vm0, %v3572_v0 }
 0x187   :  { %1349 = vmatpush1.bf16.msra.mxu0 %v3657_v31  ;;  %3210 = vmatpush3.bf16.msra.mxu1 %v3398_v25  ;;  %v2078_v25 = vrot.slane %v2076_v22, 2 }
 0x188   :  { %1350 = vmatprep.subr.bf16.mxu0 %v3660_v32  ;;  %3211 = vmatprep.subr.bf16.mxu1 %v3572_v0 }
 0x18b   :  { %1351 = vmatpush1.bf16.msra.mxu0 %v3664_v34  ;;  %3212 = vmatpush3.bf16.msra.mxu1 %v3399_v26  ;;  %v3455_v26 = vld [vmem:[#allocation6 + $0x80] ss:$12 sps:$4 sm:$0xff]  }
 0x18c   :  { %1352 = vmatprep.subr.bf16.mxu0 %v3667_v35  ;;  %3213 = vmatprep.subr.bf16.mxu1 %v3572_v0 }
 0x18f   :  { %1353 = vmatpush1.bf16.msra.mxu0 %v3671_v37  ;;  %3214 = vmatpush3.bf16.msra.mxu1 %v3400_v29  ;;  %v3456_v29 = vld [vmem:[#allocation6 + $0x68] ss:$12 sps:$4 sm:$0xff]  }
 0x190   :  { %1354 = vmatprep.subr.bf16.mxu0 %v3674_v38  ;;  %3215 = vmatprep.subr.bf16.mxu1 %v3572_v0 }
 0x193   :  { %1355 = vmatpush1.bf16.msra.mxu0 %v3678_v40  ;;  %3216 = vmatpush3.bf16.msra.mxu1 %v3401_v30  ;;  %v3457_v30 = vld [vmem:[#allocation6 + $0x50] ss:$12 sps:$4 sm:$0xff]  }
 0x194   :  { %1356 = vmatprep.subr.bf16.mxu0 %v3683_v41  ;;  %3217 = vmatprep.subr.bf16.mxu1 %v3572_v0 }
 0x197   :  { %1357 = vmatpush1.bf16.msra.mxu0 %v3687_v43  ;;  %3218 = vmatpush3.bf16.msra.mxu1 %v3402_v33  ;;  %v3458_v33 = vld [vmem:[#allocation6 + $0x38] ss:$12 sps:$4 sm:$0xff]  }
 0x198   :  { %1358 = vmatprep.subr.bf16.mxu0 %v3690_v44  ;;  %3219 = vmatprep.subr.bf16.mxu1 %v3572_v0 }
 0x19b   :  { %1359 = vmatpush1.bf16.msra.mxu0 %v3694_v46  ;;  %3220 = vmatpush3.bf16.msra.mxu1 %v3403_v36  ;;  %v3459_v36 = vld [vmem:[#allocation6 + $0x20] ss:$12 sps:$4 sm:$0xff]  }
 0x19c   :  { %1360 = vmatprep.subr.bf16.mxu0 %v3697_v47  ;;  %3221 = vmatprep.subr.bf16.mxu1 %v3572_v0 }
 0x19f   :  { %1361 = vmatpush1.bf16.msra.mxu0 %v3701_v49  ;;  %3222 = vmatpush3.bf16.msra.mxu1 %v3404_v39  ;;  %v3460_v39 = vld [vmem:[#allocation6 + $0x8] ss:$12 sps:$4 sm:$0xff]  }
 0x1a0   :  { %1634 = vmatprep.subr.bf16.mxu0 %v3645_v24  ;;  %3227 = vmatprep.subr.bf16.mxu1 %v3572_v0  ;;  %v3407_v24 = vld [vmem:[#allocation6 + $0x80] ss:$12 sps:$4 sm:$0xff]  }
 0x1a2   :  { %1379 = vmatmul.mubr.bf16.vlgmr.msra.gmra.mxu0 %v1216_v48  ;;  %3224 = vmatmul.mubr.bf16.vlgmr.msra.gmra.mxu1 %v1216_v48  ;;  %v3461_v48 = vld [vmem:[#allocation8 + $0x70] ss:$8 sps:$4 sm:$0xff]  }
 0x1a3   :  { %1635 = vmatpush1.bf16.msra.mxu0 %v3648_v27  ;;  %3228 = vmatpush3.bf16.msra.mxu1 %v3405_v45  ;;  %v3408_v27 = vld [vmem:[#allocation6 + $0x68] ss:$12 sps:$4 sm:$0xff]  }
 0x1a4   :  { %1636 = vmatprep.subr.bf16.mxu0 %v3650_v28  ;;  %3229 = vmatprep.subr.bf16.mxu1 %v3572_v0  ;;  %v3409_v28 = vld [vmem:[#allocation6 + $0x50] ss:$12 sps:$4 sm:$0xff]  }
 0x1a5   :  { %1666 = vmatprep.mubr.bf16.mxu0 %v3573_v1  ;;  %3243 = vmatprep.mubr.msk.bf16.mxu1 %vm3574_vm0, %v3572_v0  ;;  %v3463_v45 = vld [vmem:[#allocation8 + $0x74] ss:$8 sps:$4 sm:$0xff]  }
 0x1a7   :  { %1637 = vmatpush1.bf16.msra.mxu0 %v3657_v31  ;;  %3230 = vmatpush3.bf16.msra.mxu1 %v3406_v51  ;;  %v3410_v31 = vld [vmem:[#allocation6 + $0x38] ss:$12 sps:$4 sm:$0xff]   ;;  %v2364_v51 = vrot.slane %v2330_v42, 3 }
 0x1a8   :  { %1638 = vmatprep.subr.bf16.mxu0 %v3660_v32  ;;  %3231 = vmatprep.subr.bf16.mxu1 %v3572_v0  ;;  %v3411_v32 = vld [vmem:[#allocation6 + $0x20] ss:$12 sps:$4 sm:$0xff]  }
 0x1ab   :  { %1639 = vmatpush1.bf16.msra.mxu0 %v3664_v34  ;;  %3232 = vmatpush3.bf16.msra.mxu1 %v3407_v24  ;;  %v1468_v34 = vpack.c.bf16 %v3766_v50, %v3766_v50  ;;  %v3445_v50 = vld [vmem:[#allocation6 + $0xb0] ss:$12 sps:$4 sm:$0xff]   ;;  %v3466_v24 = vld [vmem:[#allocation8 + $0x64] ss:$8 sps:$4 sm:$0xff]  }
 0x1ac   :  { %1640 = vmatprep.subr.bf16.mxu0 %v3667_v35  ;;  %3233 = vmatprep.subr.bf16.mxu1 %v3572_v0  ;;  %v3412_v35 = vld [vmem:[#allocation6 + $0x8] ss:$12 sps:$4 sm:$0xff]  }
 0x1af   :  { %1641 = vmatpush1.bf16.msra.mxu0 %v3671_v37  ;;  %3234 = vmatpush3.bf16.msra.mxu1 %v3408_v27  ;;  %v1502_v37 = vshrl.u32 %v1468_v34, 16 }
 0x1b0   :  { %1642 = vmatprep.subr.bf16.mxu0 %v3674_v38  ;;  %3235 = vmatprep.subr.bf16.mxu1 %v3572_v0  ;;  %v3864_v38 = vld [vmem:[#allocation6 + $0xac] ss:$12 sps:$4 sm:$0xff]  }
 0x1b3   :  { %1643 = vmatpush1.bf16.msra.mxu0 %v3678_v40  ;;  %3236 = vmatpush3.bf16.msra.mxu1 %v3409_v28  ;;  %v3867_v40 = vld [vmem:[#allocation6 + $0xa8] ss:$12 sps:$4 sm:$0xff]  }
 0x1b4   :  { %1644 = vmatprep.subr.bf16.mxu0 %v3683_v41  ;;  %3237 = vmatprep.subr.bf16.mxu1 %v3572_v0  ;;  %v3416_v41 = vld [vmem:[#allocation6 + $0xb0] ss:$12 sps:$4 sm:$0xff]  }
 0x1b7   :  { %1645 = vmatpush1.bf16.msra.mxu0 %v3687_v43  ;;  %3238 = vmatpush3.bf16.msra.mxu1 %v3410_v31  ;;  %v1504_v43 = vrot.slane %v1502_v37, 1  ;;  %v3464_v31 = vld [vmem:[#allocation8 + $0x60] ss:$8 sps:$4 sm:$0xff]   ;;  %v3467_v37 = vld [vmem:[#allocation8 + $0x50] ss:$8 sps:$4 sm:$0xff]  }
 0x1b8   :  { %1646 = vmatprep.subr.bf16.mxu0 %v3690_v44  ;;  %3239 = vmatprep.subr.bf16.mxu1 %v3572_v0  ;;  %v3871_v44 = vld [vmem:[#allocation6 + $0x94] ss:$12 sps:$4 sm:$0xff]  }
 0x1bb   :  { %1647 = vmatpush1.bf16.msra.mxu0 %v3694_v46  ;;  %3240 = vmatpush3.bf16.msra.mxu1 %v3411_v32  ;;  %v3874_v46 = vld [vmem:[#allocation6 + $0x90] ss:$12 sps:$4 sm:$0xff]  }
 0x1bc   :  { %1648 = vmatprep.subr.bf16.mxu0 %v3697_v47  ;;  %3241 = vmatprep.subr.bf16.mxu1 %v3572_v0  ;;  %v3420_v47 = vld [vmem:[#allocation6 + $0x98] ss:$12 sps:$4 sm:$0xff]  }
 0x1bf   :  { %1649 = vmatpush1.bf16.msra.mxu0 %v3701_v49  ;;  %3242 = vmatpush3.bf16.msra.mxu1 %v3412_v35  ;;  %v3878_v49 = vld [vmem:[#allocation6 + $0x7c] ss:$12 sps:$4 sm:$0xff]  }
 0x1c0   :  { %1920 = vmatprep.subr.bf16.mxu0 %v3864_v38  ;;  %3247 = vmatprep.subr.bf16.mxu1 %v3572_v0 }
 0x1c2   :  { %1667 = vmatmul.mubr.bf16.vlgmr.msra.gmra.mxu0 %v1504_v43  ;;  %3244 = vmatmul.mubr.bf16.vlgmr.msra.gmra.mxu1 %v1504_v43  ;;  %v3470_v43 = vld [vmem:[#allocation8 + $0x40] ss:$8 sps:$4 sm:$0xff]  }
 0x1c3   :  { %1921 = vmatpush1.bf16.msra.mxu0 %v3867_v40  ;;  %3248 = vmatpush3.bf16.msra.mxu1 %v3416_v41  ;;  %v3472_v41 = vld [vmem:[#allocation8 + $0x44] ss:$8 sps:$4 sm:$0xff]  }
 0x1c4   :  { %1922 = vmatprep.subr.bf16.mxu0 %v3871_v44  ;;  %3249 = vmatprep.subr.bf16.mxu1 %v3572_v0 }
 0x1c5   :  { %1952 = vmatprep.mubr.bf16.mxu0 %v3573_v1  ;;  %3263 = vmatprep.mubr.msk.bf16.mxu1 %vm3574_vm0, %v3572_v0 }
 0x1c7   :  { %1923 = vmatpush1.bf16.msra.mxu0 %v3874_v46  ;;  %3250 = vmatpush3.bf16.msra.mxu1 %v3420_v47  ;;  %v3476_v47 = vld [vmem:[#allocation8 + $0x20] ss:$8 sps:$4 sm:$0xff]  }
 0x1c8   :  { %1924 = vmatprep.subr.bf16.mxu0 %v3878_v49  ;;  %3251 = vmatprep.subr.bf16.mxu1 %v3572_v0 }
 0x1cb   :  { %1925 = vmatpush1.bf16.msra.mxu0 %v3884_v52  ;;  %3252 = vmatpush3.bf16.msra.mxu1 %v3424_v53  ;;  %v3484_v53 = vld [vmem:[#allocation8 + $0x4] ss:$8 sps:$4 sm:$0xff]  }
 0x1cc   :  { %1926 = vmatprep.subr.bf16.mxu0 %v3888_v54  ;;  %3253 = vmatprep.subr.bf16.mxu1 %v3572_v0 }
 0x1cf   :  { %1927 = vmatpush1.bf16.msra.mxu0 %v3891_v55  ;;  %3254 = vmatpush3.bf16.msra.mxu1 %v3428_v56 }
 0x1d0   :  { %1928 = vmatprep.subr.bf16.mxu0 %v3895_v57  ;;  %3255 = vmatprep.subr.bf16.mxu1 %v3572_v0 }
 0x1d3   :  { %1929 = vmatpush1.bf16.msra.mxu0 %v3898_v58  ;;  %3256 = vmatpush3.bf16.msra.mxu1 %v3432_v59 }
 0x1d4   :  { %1930 = vmatprep.subr.bf16.mxu0 %v3902_v60  ;;  %3257 = vmatprep.subr.bf16.mxu1 %v3572_v0 }
 0x1d7   :  { %1931 = vmatpush1.bf16.msra.mxu0 %v3905_v61  ;;  %3258 = vmatpush3.bf16.msra.mxu1 %v3436_v62 }
 0x1d8   :  { %1932 = vmatprep.subr.bf16.mxu0 %v3909_v63  ;;  %3259 = vmatprep.subr.bf16.mxu1 %v3572_v0 }
 0x1db   :  { %1933 = vmatpush1.bf16.msra.mxu0 %v3912_v2  ;;  %3260 = vmatpush3.bf16.msra.mxu1 %v3440_v3 }
 0x1dc   :  { %1934 = vmatprep.subr.bf16.mxu0 %v3916_v4  ;;  %3261 = vmatprep.subr.bf16.mxu1 %v3572_v0 }
 0x1df   :  { %1935 = vmatpush1.bf16.msra.mxu0 %v3919_v6  ;;  %3262 = vmatpush3.bf16.msra.mxu1 %v3444_v7 }
 0x1e0   :  { %2208 = vmatprep.subr.bf16.mxu0 %v3864_v38  ;;  %3267 = vmatprep.subr.bf16.mxu1 %v3572_v0 }
 0x1e2   :  { %1953 = vmatmul.mubr.bf16.vlgmr.msra.gmra.mxu0 %v1790_v9  ;;  %3264 = vmatmul.mubr.bf16.vlgmr.msra.gmra.mxu1 %v1790_v9 }
 0x1e3   :  { %2209 = vmatpush1.bf16.msra.mxu0 %v3867_v40  ;;  %3268 = vmatpush3.bf16.msra.mxu1 %v3445_v50 }
 0x1e4   :  { %2210 = vmatprep.subr.bf16.mxu0 %v3871_v44  ;;  %3269 = vmatprep.subr.bf16.mxu1 %v3572_v0 }
 0x1e5   :  { %2240 = vmatprep.mubr.bf16.mxu0 %v3573_v1  ;;  %3283 = vmatprep.mubr.msk.bf16.mxu1 %vm3574_vm0, %v3572_v0 }
 0x1e7   :  { %2211 = vmatpush1.bf16.msra.mxu0 %v3874_v46  ;;  %3270 = vmatpush3.bf16.msra.mxu1 %v3446_v15 }
 0x1e8   :  { %2212 = vmatprep.subr.bf16.mxu0 %v3878_v49  ;;  %3271 = vmatprep.subr.bf16.mxu1 %v3572_v0 }
 0x1eb   :  { %2213 = vmatpush1.bf16.msra.mxu0 %v3884_v52  ;;  %3272 = vmatpush3.bf16.msra.mxu1 %v3447_v8 }
 0x1ec   :  { %2214 = vmatprep.subr.bf16.mxu0 %v3888_v54  ;;  %3273 = vmatprep.subr.bf16.mxu1 %v3572_v0 }
 0x1ef   :  { %2215 = vmatpush1.bf16.msra.mxu0 %v3891_v55  ;;  %3274 = vmatpush3.bf16.msra.mxu1 %v3448_v16 }
 0x1f0   :  { %2216 = vmatprep.subr.bf16.mxu0 %v3895_v57  ;;  %3275 = vmatprep.subr.bf16.mxu1 %v3572_v0 }
 0x1f3   :  { %2217 = vmatpush1.bf16.msra.mxu0 %v3898_v58  ;;  %3276 = vmatpush3.bf16.msra.mxu1 %v3449_v17 }
 0x1f4   :  { %2218 = vmatprep.subr.bf16.mxu0 %v3902_v60  ;;  %3277 = vmatprep.subr.bf16.mxu1 %v3572_v0 }
 0x1f7   :  { %2219 = vmatpush1.bf16.msra.mxu0 %v3905_v61  ;;  %3278 = vmatpush3.bf16.msra.mxu1 %v3450_v18 }
 0x1f8   :  { %2220 = vmatprep.subr.bf16.mxu0 %v3909_v63  ;;  %3279 = vmatprep.subr.bf16.mxu1 %v3572_v0 }
 0x1fb   :  { %2221 = vmatpush1.bf16.msra.mxu0 %v3912_v2  ;;  %3280 = vmatpush3.bf16.msra.mxu1 %v3451_v19 }
 0x1fc   :  { %2222 = vmatprep.subr.bf16.mxu0 %v3916_v4  ;;  %3281 = vmatprep.subr.bf16.mxu1 %v3572_v0 }
 0x1ff   :  { %2223 = vmatpush1.bf16.msra.mxu0 %v3919_v6  ;;  %3282 = vmatpush3.bf16.msra.mxu1 %v3452_v21 }
 0x200   :  { %2494 = vmatprep.subr.bf16.mxu0 %v3864_v38  ;;  %3287 = vmatprep.subr.bf16.mxu1 %v3572_v0 }
 0x202   :  { %2241 = vmatmul.mubr.bf16.vlgmr.msra.gmra.mxu0 %v2078_v25  ;;  %3284 = vmatmul.mubr.bf16.vlgmr.msra.gmra.mxu1 %v2078_v25 }
 0x203   :  { %2495 = vmatpush1.bf16.msra.mxu0 %v3867_v40  ;;  %3288 = vmatpush3.bf16.msra.mxu1 %v3453_v23 }
 0x204   :  { %2496 = vmatprep.subr.bf16.mxu0 %v3871_v44  ;;  %3289 = vmatprep.subr.bf16.mxu1 %v3572_v0  ;;  %v3475_v44 = vld [vmem:[#allocation8 + $0x34] ss:$8 sps:$4 sm:$0xff]  }
 0x205   :  { %2526 = vmatprep.mubr.bf16.mxu0 %v3573_v1  ;;  %3303 = vmatprep.mubr.msk.bf16.mxu1 %vm3574_vm0, %v3572_v0 }
 0x207   :  { %2497 = vmatpush1.bf16.msra.mxu0 %v3874_v46  ;;  %3290 = vmatpush3.bf16.msra.mxu1 %v3454_v12  ;;  %v3473_v46 = vld [vmem:[#allocation8 + $0x30] ss:$8 sps:$4 sm:$0xff]  }
 0x208   :  { %2498 = vmatprep.subr.bf16.mxu0 %v3878_v49  ;;  %3291 = vmatprep.subr.bf16.mxu1 %v3572_v0  ;;  %v3481_v49 = vld [vmem:[#allocation8 + $0x14] ss:$8 sps:$4 sm:$0xff]  }
 0x20b   :  { %2499 = vmatpush1.bf16.msra.mxu0 %v3884_v52  ;;  %3292 = vmatpush3.bf16.msra.mxu1 %v3455_v26  ;;  %v3479_v52 = vld [vmem:[#allocation8 + $0x10] ss:$8 sps:$4 sm:$0xff]  }
 0x20c   :  { %2500 = vmatprep.subr.bf16.mxu0 %v3888_v54  ;;  %3293 = vmatprep.subr.bf16.mxu1 %v3572_v0  ;;  %v3482_v54 = vld [vmem:[#allocation8] ss:$8 sps:$4 sm:$0xff]  }
 0x20f   :  { %2501 = vmatpush1.bf16.msra.mxu0 %v3891_v55  ;;  %3294 = vmatpush3.bf16.msra.mxu1 %v3456_v29  ;;  %v2618_v55 = vld [vmem:[#allocation3] sm:$0xff] }
 0x210   :  { %2502 = vmatprep.subr.bf16.mxu0 %v3895_v57  ;;  %3295 = vmatprep.subr.bf16.mxu1 %v3572_v0  ;;  %v2619_v56 = vpack.c.bf16 %v2618_v55, %v2618_v55 }
 0x213   :  { %2503 = vmatpush1.bf16.msra.mxu0 %v3898_v58  ;;  %3296 = vmatpush3.bf16.msra.mxu1 %v3457_v30 }
 0x214   :  { %2504 = vmatprep.subr.bf16.mxu0 %v3902_v60  ;;  %3297 = vmatprep.subr.bf16.mxu1 %v3572_v0 }
 0x217   :  { %2505 = vmatpush1.bf16.msra.mxu0 %v3905_v61  ;;  %3298 = vmatpush3.bf16.msra.mxu1 %v3458_v33 }
 0x218   :  { %2506 = vmatprep.subr.bf16.mxu0 %v3909_v63  ;;  %3299 = vmatprep.subr.bf16.mxu1 %v3572_v0 }
 0x21b   :  { %2507 = vmatpush1.bf16.msra.mxu0 %v3912_v2  ;;  %3300 = vmatpush3.bf16.msra.mxu1 %v3459_v36 }
 0x21c   :  { %2508 = vmatprep.subr.bf16.mxu0 %v3916_v4  ;;  %3301 = vmatprep.subr.bf16.mxu1 %v3572_v0 }
 0x21f   :  { %2509 = vmatpush1.bf16.msra.mxu0 %v3919_v6  ;;  %3302 = vmatpush3.bf16.msra.mxu1 %v3460_v39 }
 0x220   :  { %2728 = vmatprep.subr.bf16.mxu0 %v3463_v45 }
 0x222   :  { %2527 = vmatmul.mubr.bf16.vlgmr.msra.gmra.mxu0 %v2364_v51  ;;  %3304 = vmatmul.mubr.bf16.vlgmr.msra.gmra.mxu1 %v2364_v51  ;;  %v807_v27 = vpop.f32.mrf.mxu0  ;;  %v848_v28 = vpop.f32.mrf.mxu1 }
 0x223   :  { %2729 = vmatpush1.bf16.msra.mxu0 %v3461_v48  ;;  %2760 = vmatprep.mubr.bf16.mxu0 %v3573_v1  ;;  %v3478_v1 = vld [vmem:[#allocation8 + $0x24] ss:$8 sps:$4 sm:$0xff]  }
 0x224   :  { %v809_v0 = vpop.f32.mrf.mxu0  ;;  %v3185_v32 = vpop.f32.mrf.mxu1  ;;  %2730 = vmatprep.subr.bf16.mxu0 %v3466_v24 }
 0x226   :  { %v811_v34 = vpop.f32.mrf.mxu0  ;;  %v851_v35 = vpop.f32.mrf.mxu1 }
 0x227   :  { %2731 = vmatpush1.bf16.msra.mxu0 %v3464_v31 }
 0x228   :  { %v812_v38 = vpop.f32.mrf.mxu0  ;;  %v3186_v40 = vpop.f32.mrf.mxu1  ;;  %2732 = vmatprep.subr.bf16.mxu0 %v3469_v13 }
 0x229   :  { %v2636_v40 = vld [vmem:[%s4005_s7] sm:$0x3] }
 0x22b   :  { %2733 = vmatpush1.bf16.msra.mxu0 %v3467_v37 }
 0x22c   :  { %2734 = vmatprep.subr.bf16.mxu0 %v3472_v41  ;;  %v2641_v41 = vrot.slane %v2636_v40, %v117_v11 }
 0x22f   :  { %2735 = vmatpush1.bf16.msra.mxu0 %v3470_v43  ;;  %v2645_v43 = vrot.slane %v2636_v40, %v121_v14 }
 0x230   :  { %2736 = vmatprep.subr.bf16.mxu0 %v3475_v44 }
 0x233   :  { %2737 = vmatpush1.bf16.msra.mxu0 %v3473_v46 }
 0x234   :  { %2738 = vmatprep.subr.bf16.mxu0 %v3478_v1 }
 0x237   :  { %2739 = vmatpush1.bf16.msra.mxu0 %v3476_v47 }
 0x238   :  { %2740 = vmatprep.subr.bf16.mxu0 %v3481_v49 }
 0x23b   :  { %2741 = vmatpush1.bf16.msra.mxu0 %v3479_v52 }
 0x23c   :  { %2742 = vmatprep.subr.bf16.mxu0 %v3484_v53 }
 0x23f   :  { %2743 = vmatpush1.bf16.msra.mxu0 %v3482_v54 }
 0x242   :  { %v1094_v57 = vpop.f32.mrf.mxu0  ;;  %v1135_v58 = vpop.f32.mrf.mxu1  ;;  %2761 = vmatmul.mubr.bf16.vlgmr.msra.gmra.mxu0 %v2619_v56 }
 0x244   :  { %v1096_v59 = vpop.f32.mrf.mxu0  ;;  %v3205_v60 = vpop.f32.mrf.mxu1 }
 0x246   :  { %v1098_v61 = vpop.f32.mrf.mxu0  ;;  %v1138_v62 = vpop.f32.mrf.mxu1 }
 0x248   :  { %v1099_v63 = vpop.f32.mrf.mxu0  ;;  %v3206_v2 = vpop.f32.mrf.mxu1 }
 0x262   :  { %v1380_v3 = vpop.f32.mrf.mxu0  ;;  %v1421_v4 = vpop.f32.mrf.mxu1 }
 0x264   :  { %v1382_v6 = vpop.f32.mrf.mxu0  ;;  %v3225_v7 = vpop.f32.mrf.mxu1 }
 0x266   :  { %v1384_v5 = vpop.f32.mrf.mxu0  ;;  %v1424_v50 = vpop.f32.mrf.mxu1 }
 0x268   :  { %v1385_v9 = vpop.f32.mrf.mxu0  ;;  %v3226_v15 = vpop.f32.mrf.mxu1 }
 0x282   :  { %v1668_v8 = vpop.f32.mrf.mxu0  ;;  %v1709_v16 = vpop.f32.mrf.mxu1 }
 0x284   :  { %v1670_v17 = vpop.f32.mrf.mxu0  ;;  %v3245_v18 = vpop.f32.mrf.mxu1 }
 0x286   :  { %v1672_v19 = vpop.f32.mrf.mxu0  ;;  %v1712_v20 = vpop.f32.mrf.mxu1 }
 0x288   :  { %v1673_v21 = vpop.f32.mrf.mxu0  ;;  %v3246_v22 = vpop.f32.mrf.mxu1 }
 0x2a2   :  { %v1954_v23 = vpop.f32.mrf.mxu0  ;;  %v1995_v25 = vpop.f32.mrf.mxu1 }
 0x2a4   :  { %v1956_v12 = vpop.f32.mrf.mxu0  ;;  %v3265_v26 = vpop.f32.mrf.mxu1 }
 0x2a6   :  { %v1958_v29 = vpop.f32.mrf.mxu0  ;;  %v1998_v30 = vpop.f32.mrf.mxu1 }
 0x2a8   :  { %v1959_v33 = vpop.f32.mrf.mxu0  ;;  %v3266_v36 = vpop.f32.mrf.mxu1 }
 0x2c2   :  { %v2242_v39 = vpop.f32.mrf.mxu0  ;;  %v2283_v42 = vpop.f32.mrf.mxu1 }
 0x2c4   :  { %v2244_v45 = vpop.f32.mrf.mxu0  ;;  %v3285_v48 = vpop.f32.mrf.mxu1 }
 0x2c6   :  { %v2246_v51 = vpop.f32.mrf.mxu0  ;;  %v2286_v24 = vpop.f32.mrf.mxu1 }
 0x2c8   :  { %v2247_v27 = vpop.f32.mrf.mxu0  ;;  %v3286_v28 = vpop.f32.mrf.mxu1 }
 0x2e2   :  { %v2528_v31 = vpop.f32.mrf.mxu0  ;;  %v2569_v0 = vpop.f32.mrf.mxu1 }
 0x2e4   :  { %v2530_v32 = vpop.f32.mrf.mxu0  ;;  %v3305_v13 = vpop.f32.mrf.mxu1 }
 0x2e6   :  { %v2532_v34 = vpop.f32.mrf.mxu0  ;;  %v2572_v35 = vpop.f32.mrf.mxu1 }
 0x2e8   :  { %v2533_v37 = vpop.f32.mrf.mxu0  ;;  %v3306_v38 = vpop.f32.mrf.mxu1 }
 0x302   :  { %v2762_v44 = vpop.f32.mrf.mxu0 }
 0x303   :  { %v2763_v1 = vadd.f32 %v2762_v44, %v2641_v41 }
 0x304   :  { %v2764_v46 = vpop.f32.mrf.mxu0 }
 0x305   :  { %v2765_v47 = vadd.f32 %v2764_v46, %v2645_v43 }
 0x306   :  { %v2766_v49 = vpop.f32.mrf.mxu0 }
 0x307   :  { %v2769_v52 = vmax.f32 %v2763_v1, %v2765_v47 }
 0x308   :  { %v2767_v53 = vpop.f32.mrf.mxu0 }
 0x309   :  { %2770 = vmax.xlane.f32.xlu0 %v2769_v52 }
 0x392   :  { %v2771_v54 = vpop.xlane.xlu0 %2770 }
 0x393   :  { %v2772_v55 = vsub.f32 %v2763_v1, %v2771_v54  ;;  %v2773_v56 = vsub.f32 %v2765_v47, %v2771_v54 }
 0x395   :  { %v2774_v57 = vmul.f32 1.442695, %v2772_v55  ;;  %v2776_v58 = vmul.f32 1.442695, %v2773_v56 }
 0x397   :  { %3495 = vpow2.f32 %v2774_v57 }
 0x398   :  { %3497 = vpow2.f32 %v2776_v58 }
 0x3a4   :  { %v3496_v59 = vpop.eup %3495 }
 0x3a5   :  { %v3498_v11 = vpop.eup %3497 }
 0x3a6   :  { %v2778_v60 = vadd.f32 %v3498_v11, %v3496_v59 }
 0x3a8   :  { %2779 = vadd.xlane.f32.xlu0 %v2778_v60 }
 0x431   :  { %v2780_v10 = vpop.xlane.xlu0 %2779 }
 0x432   :  { %3499 = vlog2.f32 %v2780_v10 }
 0x43f   :  { %v3500_v14 = vpop.eup %3499 }
 0x440   :  { %v2782_v61 = vmul.f32 0.6931472, %v3500_v14 }
 0x442   :  { %v2783_v62 = vadd.f32 %v2782_v61, %v2771_v54 }
 0x444   :  { %v2784_v63 = vsub.f32 %v2763_v1, %v2783_v62  ;;  %v2785_v2 = vsub.f32 %v2765_v47, %v2783_v62 }
 0x446   :  { %2786 = vst [vmem:[%s4006_s8] sm:$0xff] %v2784_v63  ;;  %2787 = vst [vmem:[%s4006_s8 + $0x8] sm:$0xff] %v2785_v2 }
 0x447   :  { %2796 = vsyncpa [#allocation5], 1 }
 0x448   :  { %2797 = vsyncpa [#allocation7], 1 }

</bundles_post_ra>
